<compile_context>
chip_gen: v7x
topology: tpu7x:2x2x1
jax: 0.10.0
libtpu: 0.0.40
codegen_flags: <defaults>
</compile_context>

<pallas_src>
import functools

import jax
import jax.numpy as jnp
from jax.experimental import pallas as pl
from jax.experimental.pallas import tpu as pltpu


def _round_up(n: int, m: int) -> int:
    return ((n + m - 1) // m) * m


def _mlp_kernel(x_ref, w1_ref, b1_ref, w2_ref, b2_ref, w3_ref, b3_ref, o_ref):
    # Layer 1: ReLU(x @ W1 + b1) — bf16 MXU matmul, f32 accumulation.
    x = x_ref[...].astype(jnp.bfloat16)
    h1 = jnp.dot(x, w1_ref[...], preferred_element_type=jnp.float32)
    h1 = jnp.maximum(h1 + b1_ref[...], 0.0)
    # Layer 2: ReLU(h1 @ W2 + b2)
    h2 = jnp.dot(h1.astype(jnp.bfloat16), w2_ref[...],
                 preferred_element_type=jnp.float32)
    h2 = jnp.maximum(h2 + b2_ref[...], 0.0)
    # Layer 3: h2 @ W3 + b3 (no activation)
    o = jnp.dot(h2.astype(jnp.bfloat16), w3_ref[...],
                preferred_element_type=jnp.float32)
    o_ref[...] = (o + b3_ref[...]).astype(o_ref.dtype)


def init_params(key, states_length, total_phases):
    """nn.Linear-style init. Weights stored (in_features, out_features), i.e.
    transposed vs torch.nn.Linear.weight, so the kernel computes x @ W + b."""
    def linear(key, fan_in, fan_out):
        kw, kb = jax.random.split(key)
        bound = 1.0 / jnp.sqrt(jnp.float32(fan_in))
        w = jax.random.uniform(kw, (fan_in, fan_out), jnp.float32, -bound, bound)
        b = jax.random.uniform(kb, (fan_out,), jnp.float32, -bound, bound)
        return w, b

    k1, k2, k3 = jax.random.split(key, 3)
    w1, b1 = linear(k1, states_length, 1000)
    w2, b2 = linear(k2, 1000, 500)
    w3, b3 = linear(k3, 500, total_phases)
    return w1, b1, w2, b2, w3, b3


def pad_params(w1, b1, w2, b2, w3, b3):
    """One-time padding + bf16 cast of the weights (hoisted off the hot path).

    Sublane (contraction) dims -> multiple of 8; lane (output) dims -> 128.
    Biases stay f32 (tiny)."""
    S, H1 = w1.shape
    H2 = w2.shape[1]
    P = w3.shape[1]
    Sp = _round_up(S, 8)
    H1p = _round_up(H1, 128)
    H2p = _round_up(H2, 128)
    Pp = _round_up(P, 128)

    w1p = jnp.zeros((Sp, H1p), jnp.bfloat16).at[:S, :H1].set(w1.astype(jnp.bfloat16))
    b1p = jnp.zeros((1, H1p), jnp.float32).at[0, :H1].set(b1)
    w2p = jnp.zeros((H1p, H2p), jnp.bfloat16).at[:H1, :H2].set(w2.astype(jnp.bfloat16))
    b2p = jnp.zeros((1, H2p), jnp.float32).at[0, :H2].set(b2)
    w3p = jnp.zeros((H2p, Pp), jnp.bfloat16).at[:H2, :P].set(w3.astype(jnp.bfloat16))
    b3p = jnp.zeros((1, Pp), jnp.float32).at[0, :P].set(b3)
    return w1p, b1p, w2p, b2p, w3p, b3p


@functools.partial(jax.jit, static_argnames=("out_features", "block_b"))
def net_forward(x, w1p, b1p, w2p, b2p, w3p, b3p, *, out_features, block_b=256):
    """Forward pass. x: (B, states_length) f32; padded params from pad_params.
    Returns (B, out_features) f32."""
    B, S = x.shape
    Sp, H1p = w1p.shape
    H2p = w2p.shape[1]
    Pp = w3p.shape[1]

    # Batch tiling: single block up to `block_b` rows, otherwise grid over batch
    # with weights resident across grid steps.
    BM = min(block_b, _round_up(B, 8))
    Bp = _round_up(B, BM)

    if (Bp, Sp) != (B, S):
        xp = jnp.zeros((Bp, Sp), jnp.float32).at[:B, :S].set(x)
    else:
        xp = x

    out_padded = pl.pallas_call(
        _mlp_kernel,
        out_shape=jax.ShapeDtypeStruct((Bp, Pp), jnp.float32),
        grid=(Bp // BM,),
        in_specs=[
            pl.BlockSpec((BM, Sp), lambda i: (i, 0)),     # x: tiled over batch
            pl.BlockSpec((Sp, H1p), lambda i: (0, 0)),    # weights/biases resident
            pl.BlockSpec((1, H1p), lambda i: (0, 0)),
            pl.BlockSpec((H1p, H2p), lambda i: (0, 0)),
            pl.BlockSpec((1, H2p), lambda i: (0, 0)),
            pl.BlockSpec((H2p, Pp), lambda i: (0, 0)),
            pl.BlockSpec((1, Pp), lambda i: (0, 0)),
        ],
        out_specs=pl.BlockSpec((BM, Pp), lambda i: (i, 0)),
        compiler_params=pltpu.CompilerParams(
            dimension_semantics=("parallel",)),
    )(xp, w1p, b1p, w2p, b2p, w3p, b3p)

    return out_padded[:B, :out_features]


if __name__ == "__main__":
    STATES_LENGTH = 32   # small "states_length"
    TOTAL_PHASES = 8     # small "total_phases"
    BATCH = 2

    key = jax.random.PRNGKey(0)
    kx, kp = jax.random.split(key)

    x = jax.random.normal(kx, (BATCH, STATES_LENGTH), jnp.float32)
    w1, b1, w2, b2, w3, b3 = init_params(kp, STATES_LENGTH, TOTAL_PHASES)

    # One-time, out-of-hot-path padding + bf16 cast.
    padded = pad_params(w1, b1, w2, b2, w3, b3)

    out = net_forward(x, *padded, out_features=TOTAL_PHASES)
    out = jax.block_until_ready(out)

    # Reference: plain-JAX f32 forward using the same bf16-rounded weights the
    # kernel streams (remaining difference is only the bf16 activation casts).
    w1q = w1.astype(jnp.bfloat16).astype(jnp.float32)
    w2q = w2.astype(jnp.bfloat16).astype(jnp.float32)
    w3q = w3.astype(jnp.bfloat16).astype(jnp.float32)
    ref = jnp.maximum(x @ w1q + b1, 0.0)
    ref = jnp.maximum(ref @ w2q + b2, 0.0)
    ref = ref @ w3q + b3

    assert out.shape == (BATCH, TOTAL_PHASES)
    assert jnp.allclose(out, ref, atol=3e-2, rtol=3e-2), "mismatch vs reference"

    print("KERNEL_OK")
</pallas_src>

<mosaic_0001>
module attributes {stable_mosaic.version = 11 : i64} {
  func.func @_mlp_kernel(%arg0: i32, %arg1: memref<8x32xf32, #tpu.memory_space<vmem>>, %arg2: memref<32x1024xbf16, #tpu.memory_space<vmem>>, %arg3: memref<1x1024xf32, #tpu.memory_space<vmem>>, %arg4: memref<1024x512xbf16, #tpu.memory_space<vmem>>, %arg5: memref<1x512xf32, #tpu.memory_space<vmem>>, %arg6: memref<512x128xbf16, #tpu.memory_space<vmem>>, %arg7: memref<1x128xf32, #tpu.memory_space<vmem>>, %arg8: memref<8x128xf32, #tpu.memory_space<vmem>>) attributes {dimension_semantics = [#tpu.dimension_semantics<parallel>], iteration_bounds = array<i64: 1>, scalar_prefetch = 0 : i64, scratch_operands = 0 : i64, tpu.core_type = #tpu.core_type<tc>, window_params = [{transform_indices = @transform_0, window_bounds = array<i64: 8, 32>}, {pipeline_mode = #tpu.pipeline_mode<synchronous>, transform_indices = @transform_1, window_bounds = array<i64: 32, 1024>}, {pipeline_mode = #tpu.pipeline_mode<synchronous>, transform_indices = @transform_2, window_bounds = array<i64: 1, 1024>}, {pipeline_mode = #tpu.pipeline_mode<synchronous>, transform_indices = @transform_3, window_bounds = array<i64: 1024, 512>}, {pipeline_mode = #tpu.pipeline_mode<synchronous>, transform_indices = @transform_4, window_bounds = array<i64: 1, 512>}, {pipeline_mode = #tpu.pipeline_mode<synchronous>, transform_indices = @transform_5, window_bounds = array<i64: 512, 128>}, {pipeline_mode = #tpu.pipeline_mode<synchronous>, transform_indices = @transform_6, window_bounds = array<i64: 1, 128>}, {transform_indices = @transform_7, window_bounds = array<i64: 8, 128>}]} {
    %c0 = arith.constant 0 : index
    %c0_0 = arith.constant 0 : index
    %0 = vector.load %arg1[%c0, %c0_0] : memref<8x32xf32, #tpu.memory_space<vmem>>, vector<8x32xf32>
    %1 = arith.truncf %0 : vector<8x32xf32> to vector<8x32xbf16>
    %c0_1 = arith.constant 0 : index
    %c0_2 = arith.constant 0 : index
    %2 = vector.load %arg2[%c0_1, %c0_2] : memref<32x1024xbf16, #tpu.memory_space<vmem>>, vector<32x1024xbf16>
    %cst = arith.constant dense<0.000000e+00> : vector<8x1024xf32>
    %3 = tpu.matmul %1, %2, %cst {dimension_numbers = #tpu.dot_dimension_numbers<[1], [0], [0], [1], [0, 0, 1, 1], [], []>} : vector<8x32xbf16>, vector<32x1024xbf16>, vector<8x1024xf32> -> vector<8x1024xf32>
    %c0_3 = arith.constant 0 : index
    %c0_4 = arith.constant 0 : index
    %4 = vector.load %arg3[%c0_3, %c0_4] : memref<1x1024xf32, #tpu.memory_space<vmem>>, vector<1x1024xf32>
    %5 = vector.broadcast %4 : vector<1x1024xf32> to vector<8x1024xf32>
    %6 = arith.addf %3, %5 : vector<8x1024xf32>
    %cst_5 = arith.constant 0.000000e+00 : f32
    %7 = vector.broadcast %cst_5 : f32 to vector<8x1024xf32>
    %8 = arith.maximumf %6, %7 : vector<8x1024xf32>
    %9 = arith.truncf %8 : vector<8x1024xf32> to vector<8x1024xbf16>
    %c0_6 = arith.constant 0 : index
    %c0_7 = arith.constant 0 : index
    %10 = vector.load %arg4[%c0_6, %c0_7] : memref<1024x512xbf16, #tpu.memory_space<vmem>>, vector<1024x512xbf16>
    %cst_8 = arith.constant dense<0.000000e+00> : vector<8x512xf32>
    %11 = tpu.matmul %9, %10, %cst_8 {dimension_numbers = #tpu.dot_dimension_numbers<[1], [0], [0], [1], [0, 0, 1, 1], [], []>} : vector<8x1024xbf16>, vector<1024x512xbf16>, vector<8x512xf32> -> vector<8x512xf32>
    %c0_9 = arith.constant 0 : index
    %c0_10 = arith.constant 0 : index
    %12 = vector.load %arg5[%c0_9, %c0_10] : memref<1x512xf32, #tpu.memory_space<vmem>>, vector<1x512xf32>
    %13 = vector.broadcast %12 : vector<1x512xf32> to vector<8x512xf32>
    %14 = arith.addf %11, %13 : vector<8x512xf32>
    %cst_11 = arith.constant 0.000000e+00 : f32
    %15 = vector.broadcast %cst_11 : f32 to vector<8x512xf32>
    %16 = arith.maximumf %14, %15 : vector<8x512xf32>
    %17 = arith.truncf %16 : vector<8x512xf32> to vector<8x512xbf16>
    %c0_12 = arith.constant 0 : index
    %c0_13 = arith.constant 0 : index
    %18 = vector.load %arg6[%c0_12, %c0_13] : memref<512x128xbf16, #tpu.memory_space<vmem>>, vector<512x128xbf16>
    %cst_14 = arith.constant dense<0.000000e+00> : vector<8x128xf32>
    %19 = tpu.matmul %17, %18, %cst_14 {dimension_numbers = #tpu.dot_dimension_numbers<[1], [0], [0], [1], [0, 0, 1, 1], [], []>} : vector<8x512xbf16>, vector<512x128xbf16>, vector<8x128xf32> -> vector<8x128xf32>
    %c0_15 = arith.constant 0 : index
    %c0_16 = arith.constant 0 : index
    %20 = vector.load %arg7[%c0_15, %c0_16] : memref<1x128xf32, #tpu.memory_space<vmem>>, vector<1x128xf32>
    %21 = vector.broadcast %20 : vector<1x128xf32> to vector<8x128xf32>
    %22 = arith.addf %19, %21 : vector<8x128xf32>
    %c0_17 = arith.constant 0 : index
    %c0_18 = arith.constant 0 : index
    %23 = vector.load %arg8[%c0_17, %c0_18] : memref<8x128xf32, #tpu.memory_space<vmem>>, vector<8x128xf32>
    tpu.vector_store %arg8[%c0_17, %c0_18], %22 {strides = array<i32>} : memref<8x128xf32, #tpu.memory_space<vmem>>, vector<8x128xf32>,
    return
  }
  func.func @transform_0(%arg0: i32) -> (i32, i32) {
    %c0_i32 = arith.constant 0 : i32
    %c0_i32_0 = arith.constant 0 : i32
    return %arg0, %c0_i32 : i32, i32
  }
  func.func @transform_1(%arg0: i32) -> (i32, i32) {
    %c0_i32 = arith.constant 0 : i32
    %c0_i32_0 = arith.constant 0 : i32
    %c0_i32_1 = arith.constant 0 : i32
    return %c0_i32, %c0_i32_0 : i32, i32
  }
  func.func @transform_2(%arg0: i32) -> (i32, i32) {
    %c0_i32 = arith.constant 0 : i32
    %c0_i32_0 = arith.constant 0 : i32
    %c0_i32_1 = arith.constant 0 : i32
    return %c0_i32, %c0_i32_0 : i32, i32
  }
  func.func @transform_3(%arg0: i32) -> (i32, i32) {
    %c0_i32 = arith.constant 0 : i32
    %c0_i32_0 = arith.constant 0 : i32
    %c0_i32_1 = arith.constant 0 : i32
    return %c0_i32, %c0_i32_0 : i32, i32
  }
  func.func @transform_4(%arg0: i32) -> (i32, i32) {
    %c0_i32 = arith.constant 0 : i32
    %c0_i32_0 = arith.constant 0 : i32
    %c0_i32_1 = arith.constant 0 : i32
    return %c0_i32, %c0_i32_0 : i32, i32
  }
  func.func @transform_5(%arg0: i32) -> (i32, i32) {
    %c0_i32 = arith.constant 0 : i32
    %c0_i32_0 = arith.constant 0 : i32
    %c0_i32_1 = arith.constant 0 : i32
    return %c0_i32, %c0_i32_0 : i32, i32
  }
  func.func @transform_6(%arg0: i32) -> (i32, i32) {
    %c0_i32 = arith.constant 0 : i32
    %c0_i32_0 = arith.constant 0 : i32
    %c0_i32_1 = arith.constant 0 : i32
    return %c0_i32, %c0_i32_0 : i32, i32
  }
  func.func @transform_7(%arg0: i32) -> (i32, i32) {
    %c0_i32 = arith.constant 0 : i32
    %c0_i32_0 = arith.constant 0 : i32
    return %arg0, %c0_i32 : i32, i32
  }
}

</mosaic_0001>

<bundles_post_ra>
// kernel: net_forward.1
= control target key start
LH: loop header
LB: loop body
LE: loop exit
PB: predicated region body
PF: predicated region fallthrough
CT: control target
= control target key end

     0   :  { %12 = vsyncpa [#allocation3], 0  ;;  %s3669_s0 = inlined_call_operand.vmem [shape: f32[8,32], index: 0, kind: input, shape index: {}]   ;;  %s3670_s1 = inlined_call_operand.hbm [shape: bf16[32,1024], index: 1, kind: input, shape index: {}]   ;;  %s3671_s2 = inlined_call_operand.vmem [shape: f32[1,1024], index: 2, kind: input, shape index: {}]   ;;  %s3672_s3 = inlined_call_operand.hbm [shape: bf16[1024,512], index: 3, kind: input, shape index: {}]   ;;  %s3673_s4 = inlined_call_operand.vmem [shape: f32[1,512], index: 4, kind: input, shape index: {}]   ;;  %s3674_s5 = inlined_call_operand.hbm [shape: bf16[512,128], index: 5, kind: input, shape index: {}]   ;;  %s3675_s6 = inlined_call_operand.vmem [shape: f32[1,128], index: 6, kind: input, shape index: {}]   ;;  %s3676_s7 = inlined_call_operand.vmem [shape: f32[8,128], index: 7, kind: output, shape index: {}]  }
   0x1   :  { %13 = vsyncpa [#allocation5], 0  ;;  %s3513_s24 = smov [#allocation4]   ;;  %s3443_s28 = scalar_lea.hbm %s3672_s3, 32768 }
   0x2   :  { %s35_s25 = sshll.u32 %s3513_s24, 4  ;;  %p3444_p0 = scmp.ne.s32.totalorder %s3672_s3, %s3443_s28  ;;  %s36_s25 = int_to_ptr.vmem [resolvable:$true] %s35_s25 }
   0x3   :  { %p3447_p1 = scmp.lt.u32.totalorder %s3443_s28, %s3672_s3 }
   0x5   :  { %p3449_p2 = pnand %p3447_p1, %p3444_p0 }
   0x7   :  { %3452 = shalt.err (!%p3449_p2)
}
   0x8   :  { %s3453_s10 = scalar_lea.vmem %s36_s25, 32768  ;;  %p3458_p4 = scmp.lt.s32.totalorder %s36_s25, %s36_s25 }
   0x9   :  { %p3454_p3 = scmp.ne.s32.totalorder %s36_s25, %s3453_s10  ;;  %p3459_p5 = scmp.lt.s32.totalorder %s3453_s10, %s3453_s10 }
   0xb   :  { %p3460_p6 = por %p3459_p5, %p3458_p4 }
   0xd   :  { %p3461_p7 = pnand %p3460_p6, %p3454_p3 }
   0xf   :  { %3464 = shalt.err (!%p3461_p7)
}
  0x10   :  { %s3514_s11 = smov 256   ;;  %s3515_s12 = smov 16  }
  0x11   :  { %41 = dma.hbm_to_vmem [thread:$0]  %s3672_s3, 32768, %s36_s25, [#allocation5], %s3514_s11, %s3514_s11, %s3515_s12  }
  0x12   :  { %s3516_s15 = smov [#allocation2]   ;;  %s3465_s19 = scalar_lea.hbm %s3670_s1, 2048 }
  0x13   :  { %s21_s16 = sshll.u32 %s3516_s15, 4  ;;  %p3466_p8 = scmp.ne.s32.totalorder %s3670_s1, %s3465_s19  ;;  %s22_s16 = int_to_ptr.vmem [resolvable:$true] %s21_s16 }
  0x14   :  { %p3469_p9 = scmp.lt.u32.totalorder %s3465_s19, %s3670_s1 }
  0x16   :  { %p3471_p10 = pnand %p3469_p9, %p3466_p8 }
  0x18   :  { %3474 = shalt.err (!%p3471_p10)
}
  0x19   :  { %s3475_s24 = scalar_lea.vmem %s22_s16, 2048  ;;  %p3480_p12 = scmp.lt.s32.totalorder %s22_s16, %s22_s16 }
  0x1a   :  { %p3476_p11 = scmp.ne.s32.totalorder %s22_s16, %s3475_s24  ;;  %p3481_p13 = scmp.lt.s32.totalorder %s3475_s24, %s3475_s24 }
  0x1c   :  { %p3482_p0 = por %p3481_p13, %p3480_p12 }
  0x1e   :  { %p3483_p1 = pnand %p3482_p0, %p3476_p11 }
  0x20   :  { %3486 = shalt.err (!%p3483_p1)
}
  0x21   :  { %s3517_s3 = smov 512   ;;  %s3518_s25 = smov 32  }
  0x22   :  { %27 = dma.hbm_to_vmem [thread:$0]  %s3670_s1, 2048, %s22_s16, [#allocation3], %s3517_s3, %s3517_s3, %s3518_s25  }
  0x23   :  { %s3519_s28 = smov [#allocation6]   ;;  %s3487_s9 = scalar_lea.hbm %s3674_s5, 4096 }
  0x24   :  { %s49_s29 = sshll.u32 %s3519_s28, 4  ;;  %p3488_p2 = scmp.ne.s32.totalorder %s3674_s5, %s3487_s9  ;;  %s50_s29 = int_to_ptr.vmem [resolvable:$true] %s49_s29 }
  0x25   :  { %p3491_p3 = scmp.lt.u32.totalorder %s3487_s9, %s3674_s5 }
  0x27   :  { %p3493_p4 = pnand %p3491_p3, %p3488_p2 }
  0x29   :  { %3496 = shalt.err (!%p3493_p4)
}
  0x2a   :  { %s3497_s14 = scalar_lea.vmem %s50_s29, 4096  ;;  %p3502_p6 = scmp.lt.s32.totalorder %s50_s29, %s50_s29 }
  0x2b   :  { %p3498_p5 = scmp.ne.s32.totalorder %s50_s29, %s3497_s14  ;;  %p3503_p7 = scmp.lt.s32.totalorder %s3497_s14, %s3497_s14 }
  0x2d   :  { %p3504_p8 = por %p3503_p7, %p3502_p6 }
  0x2f   :  { %p3505_p9 = pnand %p3504_p8, %p3498_p5 }
  0x31   :  { %3508 = shalt.err (!%p3505_p9)
}
  0x32   :  { %s3520_s1 = smov 64   ;;  %s3521_s15 = smov 4  }
  0x33   :  { %55 = dma.hbm_to_vmem [thread:$0]  %s3674_s5, 4096, %s50_s29, [#allocation5], %s3520_s1, %s3520_s1, %s3521_s15  }
  0x34   :  { %3509 = dma.done.wait [#allocation3], 2048  }
  0x35   :  { %3510 = vsyncadd [#allocation3], 4294965248 }
  0x36   :  { %3511 = dma.done.wait [#allocation5], 36864  }
  0x37   :  { %3512 = vsyncadd [#allocation5], 4294930432  ;;  %v3522_v0 = vmov 0   ;;  %v70_v1 = vld [vmem:[#allocation2] sm:$0xff]  ;;  %v71_v7 = vld [vmem:[#allocation2 + $0x8] sm:$0xff]  ;;  %vm208_vm0 = vcmask 261120  }
  0x38   :  { %244 = vmatprep.mubr.bf16.mxu0 %v3522_v0  ;;  %285 = vmatprep.mubr.bf16.mxu1 %v3522_v0  ;;  %v74_v2 = vld [vmem:[#allocation2 + $0x20] sm:$0xff]  ;;  %v75_v9 = vld [vmem:[#allocation2 + $0x28] sm:$0xff]  ;;  %v72_v15 = vld [vmem:[#allocation2 + $0x10] sm:$0xff] }
  0x39   :  { %v78_v3 = vld [vmem:[#allocation2 + $0x40] sm:$0xff]  ;;  %v2637_v4 = vcombine.high %v70_v1, %v74_v2  ;;  %v2636_v5 = vcombine.low %v70_v1, %v74_v2  ;;  %v79_v10 = vld [vmem:[#allocation2 + $0x48] sm:$0xff]  ;;  %v2639_v12 = vcombine.high %v71_v7, %v75_v9  ;;  %v2638_v13 = vcombine.low %v71_v7, %v75_v9  ;;  %v76_v16 = vld [vmem:[#allocation2 + $0x30] sm:$0xff] }
  0x3a   :  { %v82_v6 = vld [vmem:[#allocation2 + $0x60] sm:$0xff]  ;;  %v83_v11 = vld [vmem:[#allocation2 + $0x68] sm:$0xff]  ;;  %v73_v19 = vld [vmem:[#allocation2 + $0x18] sm:$0xff]  ;;  %v2641_v21 = vcombine.high %v72_v15, %v76_v16  ;;  %v2640_v28 = vcombine.low %v72_v15, %v76_v16 }
  0x3b   :  { %v2645_v8 = vcombine.high %v78_v3, %v82_v6  ;;  %212 = vmatprep.subr.bf16.mxu0 %v2637_v4  ;;  %v2647_v14 = vcombine.high %v79_v10, %v83_v11  ;;  %v2644_v17 = vcombine.low %v78_v3, %v82_v6  ;;  %v68_v18 = vld [vmem:[%s3669_s0] sm:$0xff]  ;;  %v77_v20 = vld [vmem:[#allocation2 + $0x38] sm:$0xff]  ;;  %253 = vmatprep.subr.bf16.mxu1 %v2639_v12  ;;  %v80_v23 = vld [vmem:[#allocation2 + $0x50] sm:$0xff] }
  0x3c   :  { %213 = vmatpush1.bf16.msra.mxu0 %v2636_v5  ;;  %254 = vmatpush1.bf16.msra.mxu1 %v2638_v13  ;;  %v2646_v22 = vcombine.low %v79_v10, %v83_v11  ;;  %v84_v24 = vld [vmem:[#allocation2 + $0x70] sm:$0xff]  ;;  %v69_v25 = vpack.c.bf16 %v68_v18, %v68_v18  ;;  %v2643_v26 = vcombine.high %v73_v19, %v77_v20  ;;  %v81_v27 = vld [vmem:[#allocation2 + $0x58] sm:$0xff] }
  0x3d   :  { %214 = vmatprep.subr.bf16.mxu0 %v2645_v8  ;;  %255 = vmatprep.subr.bf16.mxu1 %v2647_v14  ;;  %v85_v29 = vld [vmem:[#allocation2 + $0x78] sm:$0xff]  ;;  %v2649_v30 = vcombine.high %v80_v23, %v84_v24  ;;  %v2642_v31 = vcombine.low %v73_v19, %v77_v20  ;;  %v2648_v33 = vcombine.low %v80_v23, %v84_v24  ;;  %v3029_v34 = vld [vmem:[#allocation4 + $0x4] ss:$16 sps:$4 sm:$0xff]   ;;  %v3027_v37 = vld [vmem:[#allocation4] ss:$16 sps:$4 sm:$0xff]  }
  0x3e   :  { %v2651_v32 = vcombine.high %v81_v27, %v85_v29  ;;  %v2650_v35 = vcombine.low %v81_v27, %v85_v29  ;;  %v3032_v36 = vld [vmem:[#allocation4 + $0xc] ss:$16 sps:$4 sm:$0xff]   ;;  %v3035_v38 = vld [vmem:[#allocation4 + $0x24] ss:$16 sps:$4 sm:$0xff]   ;;  %v3030_v39 = vld [vmem:[#allocation4 + $0x8] ss:$16 sps:$4 sm:$0xff]  }
  0x3f   :  { %v3038_v40 = vld [vmem:[#allocation4 + $0x2c] ss:$16 sps:$4 sm:$0xff]   ;;  %v3033_v41 = vld [vmem:[#allocation4 + $0x20] ss:$16 sps:$4 sm:$0xff]   ;;  %v3041_v42 = vld [vmem:[#allocation4 + $0x44] ss:$16 sps:$4 sm:$0xff]  }
  0x40   :  { %215 = vmatpush1.bf16.msra.mxu0 %v2644_v17  ;;  %256 = vmatpush1.bf16.msra.mxu1 %v2646_v22  ;;  %v3036_v43 = vld [vmem:[#allocation4 + $0x28] ss:$16 sps:$4 sm:$0xff]   ;;  %v3044_v44 = vld [vmem:[#allocation4 + $0x4c] ss:$16 sps:$4 sm:$0xff]   ;;  %v3039_v45 = vld [vmem:[#allocation4 + $0x40] ss:$16 sps:$4 sm:$0xff]  }
  0x41   :  { %294 = vmatprep.subr.bf16.mxu0 %v2641_v21  ;;  %335 = vmatprep.subr.bf16.mxu1 %v2643_v26  ;;  %v3047_v46 = vld [vmem:[#allocation4 + $0x64] ss:$16 sps:$4 sm:$0xff]   ;;  %v3042_v47 = vld [vmem:[#allocation4 + $0x48] ss:$16 sps:$4 sm:$0xff]   ;;  %v3050_v48 = vld [vmem:[#allocation4 + $0x6c] ss:$16 sps:$4 sm:$0xff]  }
  0x42   :  { %v3045_v49 = vld [vmem:[#allocation4 + $0x60] ss:$16 sps:$4 sm:$0xff]   ;;  %v3053_v50 = vld [vmem:[#allocation4 + $0x84] ss:$16 sps:$4 sm:$0xff]   ;;  %v3048_v51 = vld [vmem:[#allocation4 + $0x68] ss:$16 sps:$4 sm:$0xff]  }
  0x43   :  { %2652 = vmatmul.mubr.msk.bf16.vlgmr.msra.gmra.mrb[0].mxu0 %vm208_vm0, %v69_v25  ;;  %2653 = vmatmul.mubr.msk.bf16.vlgmr.msra.gmra.mrb[0].mxu1 %vm208_vm0, %v69_v25  ;;  %v3056_v52 = vld [vmem:[#allocation4 + $0x8c] ss:$16 sps:$4 sm:$0xff]   ;;  %v3051_v53 = vld [vmem:[#allocation4 + $0x80] ss:$16 sps:$4 sm:$0xff]   ;;  %v3059_v54 = vld [vmem:[#allocation4 + $0xa4] ss:$16 sps:$4 sm:$0xff]  }
  0x44   :  { %295 = vmatpush1.bf16.msra.mxu0 %v2640_v28  ;;  %326 = vmatprep.mubr.bf16.mxu0 %v3522_v0  ;;  %v3054_v55 = vld [vmem:[#allocation4 + $0x88] ss:$16 sps:$4 sm:$0xff]   ;;  %v3062_v56 = vld [vmem:[#allocation4 + $0xac] ss:$16 sps:$4 sm:$0xff]   ;;  %v3057_v57 = vld [vmem:[#allocation4 + $0xa0] ss:$16 sps:$4 sm:$0xff]  }
  0x45   :  { %296 = vmatprep.subr.bf16.mxu0 %v2649_v30  ;;  %336 = vmatpush1.bf16.msra.mxu1 %v2642_v31  ;;  %v3065_v58 = vld [vmem:[#allocation4 + $0xc4] ss:$16 sps:$4 sm:$0xff]   ;;  %v3060_v59 = vld [vmem:[#allocation4 + $0xa8] ss:$16 sps:$4 sm:$0xff]   ;;  %v3068_v60 = vld [vmem:[#allocation4 + $0xcc] ss:$16 sps:$4 sm:$0xff]  }
  0x46   :  { %367 = vmatprep.mubr.bf16.mxu1 %v3522_v0  ;;  %337 = vmatprep.subr.bf16.mxu1 %v2651_v32  ;;  %v3063_v61 = vld [vmem:[#allocation4 + $0xc0] ss:$16 sps:$4 sm:$0xff]   ;;  %v3066_v62 = vld [vmem:[#allocation4 + $0xc8] ss:$16 sps:$4 sm:$0xff]   ;;  %v3071_v63 = vld [vmem:[#allocation4 + $0xe4] ss:$16 sps:$4 sm:$0xff]  }
  0x47   :  { %v3069_v0 = vld [vmem:[#allocation4 + $0xe0] ss:$16 sps:$4 sm:$0xff]   ;;  %v3074_v1 = vld [vmem:[#allocation4 + $0xec] ss:$16 sps:$4 sm:$0xff]   ;;  %v3077_v2 = vld [vmem:[#allocation4 + $0x104] ss:$16 sps:$4 sm:$0xff]  }
  0x48   :  { %297 = vmatpush1.bf16.msra.mxu0 %v2648_v33  ;;  %v3072_v3 = vld [vmem:[#allocation4 + $0xe8] ss:$16 sps:$4 sm:$0xff]   ;;  %v3080_v4 = vld [vmem:[#allocation4 + $0x10c] ss:$16 sps:$4 sm:$0xff]   ;;  %v3075_v5 = vld [vmem:[#allocation4 + $0x100] ss:$16 sps:$4 sm:$0xff]  }
  0x49   :  { %1950 = vmatprep.subr.bf16.mxu0 %v3029_v34  ;;  %338 = vmatpush1.bf16.msra.mxu1 %v2650_v35  ;;  %v3083_v6 = vld [vmem:[#allocation4 + $0x124] ss:$16 sps:$4 sm:$0xff]   ;;  %v3078_v7 = vld [vmem:[#allocation4 + $0x108] ss:$16 sps:$4 sm:$0xff]   ;;  %v3086_v8 = vld [vmem:[#allocation4 + $0x12c] ss:$16 sps:$4 sm:$0xff]  }
  0x4a   :  { %2114 = vmatprep.subr.bf16.mxu1 %v3032_v36  ;;  %v3081_v9 = vld [vmem:[#allocation4 + $0x120] ss:$16 sps:$4 sm:$0xff]   ;;  %v3089_v10 = vld [vmem:[#allocation4 + $0x144] ss:$16 sps:$4 sm:$0xff]   ;;  %v3084_v11 = vld [vmem:[#allocation4 + $0x128] ss:$16 sps:$4 sm:$0xff]  }
  0x4b   :  { %2654 = vmatmul.mubr.msk.bf16.vlgmr.msra.gmra.mrb[4].mxu0 %vm208_vm0, %v69_v25  ;;  %v3092_v12 = vld [vmem:[#allocation4 + $0x14c] ss:$16 sps:$4 sm:$0xff]   ;;  %v3087_v13 = vld [vmem:[#allocation4 + $0x140] ss:$16 sps:$4 sm:$0xff]   ;;  %v3095_v14 = vld [vmem:[#allocation4 + $0x164] ss:$16 sps:$4 sm:$0xff]  }
  0x4c   :  { %1951 = vmatpush1.bf16.msra.mxu0 %v3027_v37  ;;  %2655 = vmatmul.mubr.msk.bf16.vlgmr.msra.gmra.mrb[4].mxu1 %vm208_vm0, %v69_v25  ;;  %v3090_v15 = vld [vmem:[#allocation4 + $0x148] ss:$16 sps:$4 sm:$0xff]   ;;  %v3098_v16 = vld [vmem:[#allocation4 + $0x16c] ss:$16 sps:$4 sm:$0xff]   ;;  %v3093_v17 = vld [vmem:[#allocation4 + $0x160] ss:$16 sps:$4 sm:$0xff]   ;;  %v88_v37 = vlaneseq }
  0x4d   :  { %1952 = vmatprep.subr.bf16.mxu0 %v3035_v38  ;;  %2115 = vmatpush1.bf16.msra.mxu1 %v3030_v39  ;;  %v3101_v18 = vld [vmem:[#allocation4 + $0x184] ss:$16 sps:$4 sm:$0xff]   ;;  %v3096_v19 = vld [vmem:[#allocation4 + $0x168] ss:$16 sps:$4 sm:$0xff]   ;;  %v3104_v20 = vld [vmem:[#allocation4 + $0x18c] ss:$16 sps:$4 sm:$0xff]  }
  0x4e   :  { %2116 = vmatprep.subr.bf16.mxu1 %v3038_v40  ;;  %v3099_v21 = vld [vmem:[#allocation4 + $0x180] ss:$16 sps:$4 sm:$0xff]   ;;  %v3107_v22 = vld [vmem:[#allocation4 + $0x1a4] ss:$16 sps:$4 sm:$0xff]   ;;  %v3102_v23 = vld [vmem:[#allocation4 + $0x188] ss:$16 sps:$4 sm:$0xff]  }
  0x4f   :  { %v3110_v24 = vld [vmem:[#allocation4 + $0x1ac] ss:$16 sps:$4 sm:$0xff]   ;;  %v3105_v25 = vld [vmem:[#allocation4 + $0x1a0] ss:$16 sps:$4 sm:$0xff]   ;;  %v3108_v26 = vld [vmem:[#allocation4 + $0x1a8] ss:$16 sps:$4 sm:$0xff]  }
  0x50   :  { %1953 = vmatpush1.bf16.msra.mxu0 %v3033_v41  ;;  %v3113_v27 = vld [vmem:[#allocation4 + $0x1c4] ss:$16 sps:$4 sm:$0xff]   ;;  %v3116_v28 = vld [vmem:[#allocation4 + $0x1cc] ss:$16 sps:$4 sm:$0xff]   ;;  %v3111_v29 = vld [vmem:[#allocation4 + $0x1c0] ss:$16 sps:$4 sm:$0xff]  }
  0x51   :  { %1954 = vmatprep.subr.bf16.mxu0 %v3041_v42  ;;  %2117 = vmatpush1.bf16.msra.mxu1 %v3036_v43  ;;  %v3114_v30 = vld [vmem:[#allocation4 + $0x1c8] ss:$16 sps:$4 sm:$0xff]   ;;  %v3119_v31 = vld [vmem:[#allocation4 + $0x1e4] ss:$16 sps:$4 sm:$0xff]   ;;  %v3122_v32 = vld [vmem:[#allocation4 + $0x1ec] ss:$16 sps:$4 sm:$0xff]  }
  0x52   :  { %2118 = vmatprep.subr.bf16.mxu1 %v3044_v44  ;;  %v3117_v33 = vld [vmem:[#allocation4 + $0x1e0] ss:$16 sps:$4 sm:$0xff]   ;;  %v3120_v34 = vld [vmem:[#allocation4 + $0x1e8] ss:$16 sps:$4 sm:$0xff]   ;;  %v3125_v35 = vld [vmem:[#allocation4 + $0x204] ss:$16 sps:$4 sm:$0xff]  }
  0x53   :  { %v3128_v36 = vld [vmem:[#allocation4 + $0x20c] ss:$16 sps:$4 sm:$0xff]   ;;  %v3606_v38 = vshrl.u32 %v88_v37, 7  ;;  %v3612_v40 = vld [vmem:[%s3671_s2] sm:$0xff] }
  0x54   :  { %1955 = vmatpush1.bf16.msra.mxu0 %v3039_v45  ;;  %v3173_v37 = vld [vmem:[#allocation4 + $0x304] ss:$16 sps:$4 sm:$0xff]  }
  0x55   :  { %1956 = vmatprep.subr.bf16.mxu0 %v3047_v46  ;;  %2119 = vmatpush1.bf16.msra.mxu1 %v3042_v47  ;;  %v90_v39 = vsub.s32 0, %v3606_v38  ;;  %v94_v41 = vsub.s32 1, %v3606_v38  ;;  %v102_v42 = vsub.s32 3, %v3606_v38 }
  0x56   :  { %2120 = vmatprep.subr.bf16.mxu1 %v3050_v48 }
  0x57   :  { %v91_v43 = vrot.slane %v3612_v40, %v90_v39  ;;  %v95_v44 = vrot.slane %v3612_v40, %v94_v41  ;;  %v103_v46 = vrot.slane %v3612_v40, %v102_v42 }
  0x58   :  { %1957 = vmatpush1.bf16.msra.mxu0 %v3045_v49 }
  0x59   :  { %1958 = vmatprep.subr.bf16.mxu0 %v3053_v50  ;;  %2121 = vmatpush1.bf16.msra.mxu1 %v3048_v51 }
  0x5a   :  { %2122 = vmatprep.subr.bf16.mxu1 %v3056_v52 }
  0x5c   :  { %1959 = vmatpush1.bf16.msra.mxu0 %v3051_v53 }
  0x5d   :  { %1960 = vmatprep.subr.bf16.mxu0 %v3059_v54  ;;  %2123 = vmatpush1.bf16.msra.mxu1 %v3054_v55 }
  0x5e   :  { %2124 = vmatprep.subr.bf16.mxu1 %v3062_v56 }
  0x60   :  { %1961 = vmatpush1.bf16.msra.mxu0 %v3057_v57 }
  0x61   :  { %1962 = vmatprep.subr.bf16.mxu0 %v3065_v58  ;;  %2125 = vmatpush1.bf16.msra.mxu1 %v3060_v59 }
  0x62   :  { %2126 = vmatprep.subr.bf16.mxu1 %v3068_v60  ;;  %v3123_v60 = vld [vmem:[#allocation4 + $0x200] ss:$16 sps:$4 sm:$0xff]  }
  0x64   :  { %1963 = vmatpush1.bf16.msra.mxu0 %v3063_v61  ;;  %v3126_v61 = vld [vmem:[#allocation4 + $0x208] ss:$16 sps:$4 sm:$0xff]  }
  0x65   :  { %1964 = vmatprep.subr.bf16.mxu0 %v3071_v63  ;;  %2127 = vmatpush1.bf16.msra.mxu1 %v3066_v62 }
  0x66   :  { %2128 = vmatprep.subr.bf16.mxu1 %v3074_v1  ;;  %v3134_v1 = vld [vmem:[#allocation4 + $0x22c] ss:$16 sps:$4 sm:$0xff]  }
  0x68   :  { %1965 = vmatpush1.bf16.msra.mxu0 %v3069_v0  ;;  %v3131_v0 = vld [vmem:[#allocation4 + $0x224] ss:$16 sps:$4 sm:$0xff]  }
  0x69   :  { %1966 = vmatprep.subr.bf16.mxu0 %v3077_v2  ;;  %2129 = vmatpush1.bf16.msra.mxu1 %v3072_v3 }
  0x6a   :  { %2130 = vmatprep.subr.bf16.mxu1 %v3080_v4 }
  0x6c   :  { %1967 = vmatpush1.bf16.msra.mxu0 %v3075_v5  ;;  %v3129_v5 = vld [vmem:[#allocation4 + $0x220] ss:$16 sps:$4 sm:$0xff]  }
  0x6d   :  { %1968 = vmatprep.subr.bf16.mxu0 %v3083_v6  ;;  %2131 = vmatpush1.bf16.msra.mxu1 %v3078_v7  ;;  %v3132_v6 = vld [vmem:[#allocation4 + $0x228] ss:$16 sps:$4 sm:$0xff]  }
  0x6e   :  { %2132 = vmatprep.subr.bf16.mxu1 %v3086_v8  ;;  %v3137_v8 = vld [vmem:[#allocation4 + $0x244] ss:$16 sps:$4 sm:$0xff]  }
  0x70   :  { %1969 = vmatpush1.bf16.msra.mxu0 %v3081_v9  ;;  %v3140_v9 = vld [vmem:[#allocation4 + $0x24c] ss:$16 sps:$4 sm:$0xff]  }
  0x71   :  { %1970 = vmatprep.subr.bf16.mxu0 %v3089_v10  ;;  %2133 = vmatpush1.bf16.msra.mxu1 %v3084_v11  ;;  %v3135_v11 = vld [vmem:[#allocation4 + $0x240] ss:$16 sps:$4 sm:$0xff]  }
  0x72   :  { %2134 = vmatprep.subr.bf16.mxu1 %v3092_v12  ;;  %v3138_v12 = vld [vmem:[#allocation4 + $0x248] ss:$16 sps:$4 sm:$0xff]  }
  0x74   :  { %1971 = vmatpush1.bf16.msra.mxu0 %v3087_v13  ;;  %v3143_v13 = vld [vmem:[#allocation4 + $0x264] ss:$16 sps:$4 sm:$0xff]  }
  0x75   :  { %1972 = vmatprep.subr.bf16.mxu0 %v3095_v14  ;;  %2135 = vmatpush1.bf16.msra.mxu1 %v3090_v15  ;;  %v3146_v14 = vld [vmem:[#allocation4 + $0x26c] ss:$16 sps:$4 sm:$0xff]   ;;  %v3141_v15 = vld [vmem:[#allocation4 + $0x260] ss:$16 sps:$4 sm:$0xff]  }
  0x76   :  { %2136 = vmatprep.subr.bf16.mxu1 %v3098_v16  ;;  %v3144_v16 = vld [vmem:[#allocation4 + $0x268] ss:$16 sps:$4 sm:$0xff]  }
  0x78   :  { %1973 = vmatpush1.bf16.msra.mxu0 %v3093_v17  ;;  %v3149_v17 = vld [vmem:[#allocation4 + $0x284] ss:$16 sps:$4 sm:$0xff]  }
  0x79   :  { %1974 = vmatprep.subr.bf16.mxu0 %v3101_v18  ;;  %2137 = vmatpush1.bf16.msra.mxu1 %v3096_v19  ;;  %v3152_v18 = vld [vmem:[#allocation4 + $0x28c] ss:$16 sps:$4 sm:$0xff]   ;;  %v3147_v19 = vld [vmem:[#allocation4 + $0x280] ss:$16 sps:$4 sm:$0xff]  }
  0x7a   :  { %2138 = vmatprep.subr.bf16.mxu1 %v3104_v20  ;;  %v3150_v20 = vld [vmem:[#allocation4 + $0x288] ss:$16 sps:$4 sm:$0xff]  }
  0x7c   :  { %1975 = vmatpush1.bf16.msra.mxu0 %v3099_v21  ;;  %v3155_v21 = vld [vmem:[#allocation4 + $0x2a4] ss:$16 sps:$4 sm:$0xff]  }
  0x7d   :  { %1976 = vmatprep.subr.bf16.mxu0 %v3107_v22  ;;  %2139 = vmatpush1.bf16.msra.mxu1 %v3102_v23  ;;  %v3158_v22 = vld [vmem:[#allocation4 + $0x2ac] ss:$16 sps:$4 sm:$0xff]   ;;  %v3153_v23 = vld [vmem:[#allocation4 + $0x2a0] ss:$16 sps:$4 sm:$0xff]  }
  0x7e   :  { %2140 = vmatprep.subr.bf16.mxu1 %v3110_v24  ;;  %v3156_v24 = vld [vmem:[#allocation4 + $0x2a8] ss:$16 sps:$4 sm:$0xff]  }
  0x80   :  { %1977 = vmatpush1.bf16.msra.mxu0 %v3105_v25 }
  0x81   :  { %2141 = vmatpush1.bf16.msra.mxu1 %v3108_v26  ;;  %1978 = vmatprep.subr.bf16.mxu0 %v3113_v27  ;;  %v3161_v26 = vld [vmem:[#allocation4 + $0x2c4] ss:$16 sps:$4 sm:$0xff]   ;;  %v3164_v27 = vld [vmem:[#allocation4 + $0x2cc] ss:$16 sps:$4 sm:$0xff]  }
  0x82   :  { %2142 = vmatprep.subr.bf16.mxu1 %v3116_v28 }
  0x84   :  { %1979 = vmatpush1.bf16.msra.mxu0 %v3111_v29 }
  0x85   :  { %2143 = vmatpush1.bf16.msra.mxu1 %v3114_v30  ;;  %1980 = vmatprep.subr.bf16.mxu0 %v3119_v31  ;;  %v3159_v31 = vld [vmem:[#allocation4 + $0x2c0] ss:$16 sps:$4 sm:$0xff]  }
  0x86   :  { %2144 = vmatprep.subr.bf16.mxu1 %v3122_v32  ;;  %v3162_v32 = vld [vmem:[#allocation4 + $0x2c8] ss:$16 sps:$4 sm:$0xff]  }
  0x88   :  { %1981 = vmatpush1.bf16.msra.mxu0 %v3117_v33  ;;  %v3167_v33 = vld [vmem:[#allocation4 + $0x2e4] ss:$16 sps:$4 sm:$0xff]  }
  0x89   :  { %2145 = vmatpush1.bf16.msra.mxu1 %v3120_v34  ;;  %1991 = vmatprep.subr.bf16.mxu0 %v3125_v35  ;;  %v3170_v34 = vld [vmem:[#allocation4 + $0x2ec] ss:$16 sps:$4 sm:$0xff]   ;;  %v3165_v35 = vld [vmem:[#allocation4 + $0x2e0] ss:$16 sps:$4 sm:$0xff]  }
  0x8a   :  { %2155 = vmatprep.subr.bf16.mxu1 %v3128_v36  ;;  %v3168_v36 = vld [vmem:[#allocation4 + $0x2e8] ss:$16 sps:$4 sm:$0xff]  }
 0x116   :  { %v246_v45 = vpop.f32.mrb[0].mxu0  ;;  %v3625_v51 = vpop.f32.mrb[0].mxu1 }
 0x117   :  { %v247_v47 = vadd.f32 %v246_v45, %v91_v43  ;;  %v248_v48 = vpop.f32.mrb[1].mxu0  ;;  %v289_v54 = vpop.f32.mrb[1].mxu1  ;;  %v3176_v43 = vld [vmem:[#allocation4 + $0x30c] ss:$16 sps:$4 sm:$0xff]   ;;  %v3174_v45 = vld [vmem:[#allocation4 + $0x308] ss:$16 sps:$4 sm:$0xff]  }
 0x118   :  { %v249_v49 = vadd.f32 %v248_v48, %v95_v44  ;;  %v250_v50 = vpop.f32.mrb[2].mxu0  ;;  %v290_v56 = vadd.f32 %v289_v54, %v103_v46  ;;  %v291_v57 = vpop.f32.mrb[2].mxu1  ;;  %v3171_v44 = vld [vmem:[#allocation4 + $0x300] ss:$16 sps:$4 sm:$0xff]   ;;  %v3179_v46 = vld [vmem:[#allocation4 + $0x324] ss:$16 sps:$4 sm:$0xff]  }
 0x119   :  { %v376_v52 = vmax.f32 %v247_v47, 0.0  ;;  %v251_v53 = vpop.f32.mrb[3].mxu0  ;;  %v292_v58 = vpop.f32.mrb[3].mxu1  ;;  %v3182_v47 = vld [vmem:[#allocation4 + $0x32c] ss:$16 sps:$4 sm:$0xff]  }
 0x11a   :  { %v377_v55 = vmax.f32 %v249_v49, 0.0  ;;  %v379_v62 = vmax.f32 %v290_v56, 0.0  ;;  %v3177_v48 = vld [vmem:[#allocation4 + $0x320] ss:$16 sps:$4 sm:$0xff]   ;;  %v3180_v49 = vld [vmem:[#allocation4 + $0x328] ss:$16 sps:$4 sm:$0xff]  }
 0x11b   :  { %v384_v63 = vpack.c.bf16 %v376_v52, %v376_v52  ;;  %v3185_v50 = vld [vmem:[#allocation4 + $0x344] ss:$16 sps:$4 sm:$0xff]   ;;  %v3188_v52 = vld [vmem:[#allocation4 + $0x34c] ss:$16 sps:$4 sm:$0xff]   ;;  %v3183_v53 = vld [vmem:[#allocation4 + $0x340] ss:$16 sps:$4 sm:$0xff]  }
 0x11c   :  { %v385_v59 = vpack.c.bf16 %v377_v55, %v377_v55  ;;  %v387_v2 = vpack.c.bf16 %v379_v62, %v379_v62  ;;  %v3186_v54 = vld [vmem:[#allocation4 + $0x348] ss:$16 sps:$4 sm:$0xff]   ;;  %v3191_v55 = vld [vmem:[#allocation4 + $0x364] ss:$16 sps:$4 sm:$0xff]   ;;  %v3194_v56 = vld [vmem:[#allocation4 + $0x36c] ss:$16 sps:$4 sm:$0xff]  }
 0x11d   :  { %v3189_v57 = vld [vmem:[#allocation4 + $0x360] ss:$16 sps:$4 sm:$0xff]   ;;  %v3192_v58 = vld [vmem:[#allocation4 + $0x368] ss:$16 sps:$4 sm:$0xff]  }
 0x11e   :  { %1982 = vmatprep.mubr.bf16.mxu0 %v385_v59  ;;  %2146 = vmatprep.mubr.bf16.mxu1 %v385_v59  ;;  %v3627_v3 = vpop.f32.mrb[4].mxu0  ;;  %v3197_v59 = vld [vmem:[#allocation4 + $0x384] ss:$16 sps:$4 sm:$0xff]   ;;  %v3195_v62 = vld [vmem:[#allocation4 + $0x380] ss:$16 sps:$4 sm:$0xff]  }
 0x11f   :  { %1983 = vmatmul.mubr.bf16.vlgmr.msra.gmra.mrb[8].mxu0 %v384_v63  ;;  %2147 = vmatmul.mubr.bf16.vlgmr.msra.gmra.mrb[8].mxu1 %v384_v63  ;;  %v3629_v4 = vpop.f32.mrb[5].mxu0  ;;  %v3631_v25 = vpop.f32.mrb[4].mxu1  ;;  %v3198_v63 = vld [vmem:[#allocation4 + $0x388] ss:$16 sps:$4 sm:$0xff]  }
 0x120   :  { %1992 = vmatpush1.bf16.msra.mxu0 %v3123_v60  ;;  %2156 = vmatpush1.bf16.msra.mxu1 %v3126_v61  ;;  %v332_v7 = vpop.f32.mrb[6].mxu0  ;;  %v3633_v28 = vpop.f32.mrb[5].mxu1  ;;  %v3200_v60 = vld [vmem:[#allocation4 + $0x38c] ss:$16 sps:$4 sm:$0xff]   ;;  %v98_v61 = vsub.s32 2, %v3606_v38 }
 0x121   :  { %1993 = vmatprep.subr.bf16.mxu0 %v3131_v0  ;;  %2157 = vmatprep.subr.bf16.mxu1 %v3134_v1  ;;  %v333_v10 = vpop.f32.mrb[7].mxu0  ;;  %v373_v29 = vpop.f32.mrb[6].mxu1  ;;  %v3203_v0 = vld [vmem:[#allocation4 + $0x3a4] ss:$16 sps:$4 sm:$0xff]   ;;  %v3206_v1 = vld [vmem:[#allocation4 + $0x3ac] ss:$16 sps:$4 sm:$0xff]  }
 0x122   :  { %2023 = vmatprep.mubr.bf16.mxu0 %v387_v2  ;;  %2187 = vmatprep.mubr.bf16.mxu1 %v387_v2  ;;  %v374_v30 = vpop.f32.mrb[7].mxu1  ;;  %v110_v2 = vsub.s32 5, %v3606_v38  ;;  %v3204_v7 = vld [vmem:[#allocation4 + $0x3a8] ss:$16 sps:$4 sm:$0xff]   ;;  %v3225_v29 = vld [vmem:[#allocation4 + $0x420] ss:$16 sps:$4 sm:$0xff]  }
 0x123   :  { %v3228_v30 = vld [vmem:[#allocation4 + $0x428] ss:$16 sps:$4 sm:$0xff]  }
 0x124   :  { %1994 = vmatpush1.bf16.msra.mxu0 %v3129_v5  ;;  %2158 = vmatpush1.bf16.msra.mxu1 %v3132_v6  ;;  %v99_v5 = vrot.slane %v3612_v40, %v98_v61  ;;  %v3201_v6 = vld [vmem:[#allocation4 + $0x3a0] ss:$16 sps:$4 sm:$0xff]   ;;  %v111_v10 = vrot.slane %v3612_v40, %v110_v2  ;;  %v3275_v2 = vld [vmem:[#allocation4 + $0x524] ss:$16 sps:$4 sm:$0xff]  }
 0x125   :  { %1995 = vmatprep.subr.bf16.mxu0 %v3137_v8  ;;  %2159 = vmatprep.subr.bf16.mxu1 %v3140_v9  ;;  %v3209_v8 = vld [vmem:[#allocation4 + $0x3c4] ss:$16 sps:$4 sm:$0xff]   ;;  %v3212_v9 = vld [vmem:[#allocation4 + $0x3cc] ss:$16 sps:$4 sm:$0xff]  }
 0x128   :  { %1996 = vmatpush1.bf16.msra.mxu0 %v3135_v11  ;;  %2160 = vmatpush1.bf16.msra.mxu1 %v3138_v12  ;;  %v288_v11 = vadd.f32 %v3625_v51, %v99_v5  ;;  %v3207_v12 = vld [vmem:[#allocation4 + $0x3c0] ss:$16 sps:$4 sm:$0xff]   ;;  %v3278_v5 = vld [vmem:[#allocation4 + $0x52c] ss:$16 sps:$4 sm:$0xff]  }
 0x129   :  { %1997 = vmatprep.subr.bf16.mxu0 %v3143_v13  ;;  %2161 = vmatprep.subr.bf16.mxu1 %v3146_v14  ;;  %v3210_v13 = vld [vmem:[#allocation4 + $0x3c8] ss:$16 sps:$4 sm:$0xff]   ;;  %v3215_v14 = vld [vmem:[#allocation4 + $0x3e4] ss:$16 sps:$4 sm:$0xff]  }
 0x12c   :  { %1998 = vmatpush1.bf16.msra.mxu0 %v3141_v15  ;;  %2162 = vmatpush1.bf16.msra.mxu1 %v3144_v16  ;;  %v3218_v15 = vld [vmem:[#allocation4 + $0x3ec] ss:$16 sps:$4 sm:$0xff]   ;;  %v331_v16 = vadd.f32 %v3629_v4, %v111_v10  ;;  %v3279_v10 = vld [vmem:[#allocation4 + $0x540] ss:$16 sps:$4 sm:$0xff]  }
 0x12d   :  { %1999 = vmatprep.subr.bf16.mxu0 %v3149_v17  ;;  %2163 = vmatprep.subr.bf16.mxu1 %v3152_v18  ;;  %v378_v17 = vmax.f32 %v288_v11, 0.0  ;;  %v3213_v18 = vld [vmem:[#allocation4 + $0x3e0] ss:$16 sps:$4 sm:$0xff]   ;;  %v3282_v11 = vld [vmem:[#allocation4 + $0x548] ss:$16 sps:$4 sm:$0xff]  }
 0x12e   :  { %v381_v51 = vmax.f32 %v331_v16, 0.0  ;;  %v3293_v16 = vld [vmem:[#allocation4 + $0x584] ss:$16 sps:$4 sm:$0xff]  }
 0x130   :  { %2000 = vmatpush1.bf16.msra.mxu0 %v3147_v19  ;;  %2164 = vmatpush1.bf16.msra.mxu1 %v3150_v20  ;;  %v3216_v19 = vld [vmem:[#allocation4 + $0x3e8] ss:$16 sps:$4 sm:$0xff]   ;;  %v3221_v20 = vld [vmem:[#allocation4 + $0x404] ss:$16 sps:$4 sm:$0xff]   ;;  %v389_v4 = vpack.c.bf16 %v381_v51, %v381_v51  ;;  %v3302_v51 = vld [vmem:[#allocation4 + $0x5ac] ss:$16 sps:$4 sm:$0xff]  }
 0x131   :  { %2001 = vmatprep.subr.bf16.mxu0 %v3155_v21  ;;  %2165 = vmatprep.subr.bf16.mxu1 %v3158_v22  ;;  %v3224_v21 = vld [vmem:[#allocation4 + $0x40c] ss:$16 sps:$4 sm:$0xff]   ;;  %v386_v22 = vpack.c.bf16 %v378_v17, %v378_v17 }
 0x132   :  { %v3296_v17 = vld [vmem:[#allocation4 + $0x58c] ss:$16 sps:$4 sm:$0xff]  }
 0x134   :  { %2002 = vmatpush1.bf16.msra.mxu0 %v3153_v23  ;;  %2166 = vmatpush1.bf16.msra.mxu1 %v3156_v24  ;;  %v3219_v23 = vld [vmem:[#allocation4 + $0x400] ss:$16 sps:$4 sm:$0xff]   ;;  %v3222_v24 = vld [vmem:[#allocation4 + $0x408] ss:$16 sps:$4 sm:$0xff]  }
 0x135   :  { %2003 = vmatprep.subr.bf16.mxu0 %v3161_v26  ;;  %2167 = vmatprep.subr.bf16.mxu1 %v3164_v27  ;;  %v3227_v26 = vld [vmem:[#allocation4 + $0x424] ss:$16 sps:$4 sm:$0xff]   ;;  %v3230_v27 = vld [vmem:[#allocation4 + $0x42c] ss:$16 sps:$4 sm:$0xff]  }
 0x138   :  { %2004 = vmatpush1.bf16.msra.mxu0 %v3159_v31  ;;  %2168 = vmatpush1.bf16.msra.mxu1 %v3162_v32  ;;  %v3233_v31 = vld [vmem:[#allocation4 + $0x444] ss:$16 sps:$4 sm:$0xff]   ;;  %v3236_v32 = vld [vmem:[#allocation4 + $0x44c] ss:$16 sps:$4 sm:$0xff]  }
 0x139   :  { %2005 = vmatprep.subr.bf16.mxu0 %v3167_v33  ;;  %2169 = vmatprep.subr.bf16.mxu1 %v3170_v34  ;;  %v3231_v33 = vld [vmem:[#allocation4 + $0x440] ss:$16 sps:$4 sm:$0xff]   ;;  %v3234_v34 = vld [vmem:[#allocation4 + $0x448] ss:$16 sps:$4 sm:$0xff]  }
 0x13c   :  { %2006 = vmatpush1.bf16.msra.mxu0 %v3165_v35  ;;  %2170 = vmatpush1.bf16.msra.mxu1 %v3168_v36  ;;  %v3239_v35 = vld [vmem:[#allocation4 + $0x464] ss:$16 sps:$4 sm:$0xff]   ;;  %v3242_v36 = vld [vmem:[#allocation4 + $0x46c] ss:$16 sps:$4 sm:$0xff]  }
 0x13d   :  { %2007 = vmatprep.subr.bf16.mxu0 %v3173_v37  ;;  %2171 = vmatprep.subr.bf16.mxu1 %v3176_v43  ;;  %v3237_v37 = vld [vmem:[#allocation4 + $0x460] ss:$16 sps:$4 sm:$0xff]   ;;  %v3240_v43 = vld [vmem:[#allocation4 + $0x468] ss:$16 sps:$4 sm:$0xff]  }
 0x140   :  { %2008 = vmatpush1.bf16.msra.mxu0 %v3171_v44  ;;  %2172 = vmatpush1.bf16.msra.mxu1 %v3174_v45  ;;  %v3245_v44 = vld [vmem:[#allocation4 + $0x484] ss:$16 sps:$4 sm:$0xff]   ;;  %v3248_v45 = vld [vmem:[#allocation4 + $0x48c] ss:$16 sps:$4 sm:$0xff]  }
 0x141   :  { %2009 = vmatprep.subr.bf16.mxu0 %v3179_v46  ;;  %2173 = vmatprep.subr.bf16.mxu1 %v3182_v47  ;;  %v3243_v46 = vld [vmem:[#allocation4 + $0x480] ss:$16 sps:$4 sm:$0xff]   ;;  %v3246_v47 = vld [vmem:[#allocation4 + $0x488] ss:$16 sps:$4 sm:$0xff]  }
 0x144   :  { %2010 = vmatpush1.bf16.msra.mxu0 %v3177_v48  ;;  %2174 = vmatpush1.bf16.msra.mxu1 %v3180_v49  ;;  %v3251_v48 = vld [vmem:[#allocation4 + $0x4a4] ss:$16 sps:$4 sm:$0xff]   ;;  %v3254_v49 = vld [vmem:[#allocation4 + $0x4ac] ss:$16 sps:$4 sm:$0xff]  }
 0x145   :  { %2011 = vmatprep.subr.bf16.mxu0 %v3185_v50  ;;  %2175 = vmatprep.subr.bf16.mxu1 %v3188_v52  ;;  %v3249_v50 = vld [vmem:[#allocation4 + $0x4a0] ss:$16 sps:$4 sm:$0xff]   ;;  %v3252_v52 = vld [vmem:[#allocation4 + $0x4a8] ss:$16 sps:$4 sm:$0xff]  }
 0x148   :  { %2012 = vmatpush1.bf16.msra.mxu0 %v3183_v53  ;;  %2176 = vmatpush1.bf16.msra.mxu1 %v3186_v54  ;;  %v3257_v53 = vld [vmem:[#allocation4 + $0x4c4] ss:$16 sps:$4 sm:$0xff]   ;;  %v3260_v54 = vld [vmem:[#allocation4 + $0x4cc] ss:$16 sps:$4 sm:$0xff]  }
 0x149   :  { %2013 = vmatprep.subr.bf16.mxu0 %v3191_v55  ;;  %2177 = vmatprep.subr.bf16.mxu1 %v3194_v56  ;;  %v3255_v55 = vld [vmem:[#allocation4 + $0x4c0] ss:$16 sps:$4 sm:$0xff]   ;;  %v3258_v56 = vld [vmem:[#allocation4 + $0x4c8] ss:$16 sps:$4 sm:$0xff]  }
 0x14c   :  { %2014 = vmatpush1.bf16.msra.mxu0 %v3189_v57  ;;  %2178 = vmatpush1.bf16.msra.mxu1 %v3192_v58  ;;  %v3263_v57 = vld [vmem:[#allocation4 + $0x4e4] ss:$16 sps:$4 sm:$0xff]   ;;  %v3266_v58 = vld [vmem:[#allocation4 + $0x4ec] ss:$16 sps:$4 sm:$0xff]  }
 0x14d   :  { %2015 = vmatprep.subr.bf16.mxu0 %v3197_v59  ;;  %2179 = vmatprep.subr.bf16.mxu1 %v3200_v60  ;;  %v3261_v59 = vld [vmem:[#allocation4 + $0x4e0] ss:$16 sps:$4 sm:$0xff]   ;;  %v3264_v60 = vld [vmem:[#allocation4 + $0x4e8] ss:$16 sps:$4 sm:$0xff]  }
 0x150   :  { %2016 = vmatpush1.bf16.msra.mxu0 %v3195_v62  ;;  %2180 = vmatpush1.bf16.msra.mxu1 %v3198_v63  ;;  %v3269_v62 = vld [vmem:[#allocation4 + $0x504] ss:$16 sps:$4 sm:$0xff]   ;;  %v3272_v63 = vld [vmem:[#allocation4 + $0x50c] ss:$16 sps:$4 sm:$0xff]  }
 0x151   :  { %2017 = vmatprep.subr.bf16.mxu0 %v3203_v0  ;;  %2181 = vmatprep.subr.bf16.mxu1 %v3206_v1  ;;  %v3267_v0 = vld [vmem:[#allocation4 + $0x500] ss:$16 sps:$4 sm:$0xff]   ;;  %v3270_v1 = vld [vmem:[#allocation4 + $0x508] ss:$16 sps:$4 sm:$0xff]  }
 0x154   :  { %2018 = vmatpush1.bf16.msra.mxu0 %v3201_v6  ;;  %2182 = vmatpush1.bf16.msra.mxu1 %v3204_v7  ;;  %v3273_v6 = vld [vmem:[#allocation4 + $0x520] ss:$16 sps:$4 sm:$0xff]   ;;  %v3276_v7 = vld [vmem:[#allocation4 + $0x528] ss:$16 sps:$4 sm:$0xff]  }
 0x155   :  { %2019 = vmatprep.subr.bf16.mxu0 %v3209_v8  ;;  %2183 = vmatprep.subr.bf16.mxu1 %v3212_v9  ;;  %v3281_v8 = vld [vmem:[#allocation4 + $0x544] ss:$16 sps:$4 sm:$0xff]   ;;  %v3284_v9 = vld [vmem:[#allocation4 + $0x54c] ss:$16 sps:$4 sm:$0xff]  }
 0x158   :  { %2020 = vmatpush1.bf16.msra.mxu0 %v3207_v12  ;;  %2184 = vmatpush1.bf16.msra.mxu1 %v3210_v13  ;;  %v3287_v12 = vld [vmem:[#allocation4 + $0x564] ss:$16 sps:$4 sm:$0xff]   ;;  %v3290_v13 = vld [vmem:[#allocation4 + $0x56c] ss:$16 sps:$4 sm:$0xff]  }
 0x159   :  { %2021 = vmatprep.subr.bf16.mxu0 %v3215_v14  ;;  %2185 = vmatprep.subr.bf16.mxu1 %v3218_v15  ;;  %v3285_v14 = vld [vmem:[#allocation4 + $0x560] ss:$16 sps:$4 sm:$0xff]   ;;  %v3288_v15 = vld [vmem:[#allocation4 + $0x568] ss:$16 sps:$4 sm:$0xff]  }
 0x15c   :  { %2022 = vmatpush1.bf16.msra.mxu0 %v3213_v18  ;;  %2186 = vmatpush1.bf16.msra.mxu1 %v3216_v19  ;;  %v106_v18 = vsub.s32 4, %v3606_v38  ;;  %v3291_v19 = vld [vmem:[#allocation4 + $0x580] ss:$16 sps:$4 sm:$0xff]  }
 0x15d   :  { %2032 = vmatprep.subr.bf16.mxu0 %v3221_v20  ;;  %2196 = vmatprep.subr.bf16.mxu1 %v3224_v21  ;;  %v3294_v20 = vld [vmem:[#allocation4 + $0x588] ss:$16 sps:$4 sm:$0xff]   ;;  %v3299_v21 = vld [vmem:[#allocation4 + $0x5a4] ss:$16 sps:$4 sm:$0xff]  }
 0x15f   :  { %2024 = vmatmul.mubr.bf16.vlgmr.msra.gmra.mrb[8].mxu0 %v386_v22  ;;  %2188 = vmatmul.mubr.bf16.vlgmr.msra.gmra.mrb[8].mxu1 %v386_v22  ;;  %v118_v22 = vsub.s32 7, %v3606_v38 }
 0x160   :  { %2033 = vmatpush1.bf16.msra.mxu0 %v3219_v23  ;;  %2197 = vmatpush1.bf16.msra.mxu1 %v3222_v24  ;;  %v107_v23 = vrot.slane %v3612_v40, %v106_v18  ;;  %v3297_v24 = vld [vmem:[#allocation4 + $0x5a0] ss:$16 sps:$4 sm:$0xff]   ;;  %v3368_v18 = vld [vmem:[#allocation4 + $0x70c] ss:$16 sps:$4 sm:$0xff]  }
 0x161   :  { %2034 = vmatprep.subr.bf16.mxu0 %v3227_v26  ;;  %2198 = vmatprep.subr.bf16.mxu1 %v3230_v27  ;;  %v3300_v26 = vld [vmem:[#allocation4 + $0x5a8] ss:$16 sps:$4 sm:$0xff]   ;;  %v3305_v27 = vld [vmem:[#allocation4 + $0x5c4] ss:$16 sps:$4 sm:$0xff]  }
 0x162   :  { %2064 = vmatprep.mubr.bf16.mxu0 %v389_v4  ;;  %2228 = vmatprep.mubr.bf16.mxu1 %v389_v4  ;;  %v3308_v4 = vld [vmem:[#allocation4 + $0x5cc] ss:$16 sps:$4 sm:$0xff]  }
 0x164   :  { %2035 = vmatpush1.bf16.msra.mxu0 %v3225_v29  ;;  %2199 = vmatpush1.bf16.msra.mxu1 %v3228_v30  ;;  %v119_v29 = vrot.slane %v3612_v40, %v118_v22  ;;  %v329_v30 = vadd.f32 %v3627_v3, %v107_v23  ;;  %v3369_v22 = vld [vmem:[#allocation4 + $0x720] ss:$16 sps:$4 sm:$0xff]   ;;  %v3372_v23 = vld [vmem:[#allocation4 + $0x728] ss:$16 sps:$4 sm:$0xff]  }
 0x165   :  { %2036 = vmatprep.subr.bf16.mxu0 %v3233_v31  ;;  %2200 = vmatprep.subr.bf16.mxu1 %v3236_v32  ;;  %v3303_v31 = vld [vmem:[#allocation4 + $0x5c0] ss:$16 sps:$4 sm:$0xff]   ;;  %v3306_v32 = vld [vmem:[#allocation4 + $0x5c8] ss:$16 sps:$4 sm:$0xff]  }
 0x168   :  { %2037 = vmatpush1.bf16.msra.mxu0 %v3231_v33  ;;  %2201 = vmatpush1.bf16.msra.mxu1 %v3234_v34  ;;  %v3311_v33 = vld [vmem:[#allocation4 + $0x5e4] ss:$16 sps:$4 sm:$0xff]   ;;  %v3314_v34 = vld [vmem:[#allocation4 + $0x5ec] ss:$16 sps:$4 sm:$0xff]  }
 0x169   :  { %2038 = vmatprep.subr.bf16.mxu0 %v3239_v35  ;;  %2202 = vmatprep.subr.bf16.mxu1 %v3242_v36  ;;  %v372_v35 = vadd.f32 %v3633_v28, %v119_v29  ;;  %v380_v36 = vmax.f32 %v329_v30, 0.0  ;;  %v3383_v29 = vld [vmem:[#allocation4 + $0x764] ss:$16 sps:$4 sm:$0xff]   ;;  %v3386_v30 = vld [vmem:[#allocation4 + $0x76c] ss:$16 sps:$4 sm:$0xff]  }
 0x16b   :  { %v383_v3 = vmax.f32 %v372_v35, 0.0  ;;  %v3387_v35 = vld [vmem:[#allocation4 + $0x780] ss:$16 sps:$4 sm:$0xff]  }
 0x16c   :  { %2039 = vmatpush1.bf16.msra.mxu0 %v3237_v37  ;;  %2203 = vmatpush1.bf16.msra.mxu1 %v3240_v43  ;;  %v3309_v37 = vld [vmem:[#allocation4 + $0x5e0] ss:$16 sps:$4 sm:$0xff]   ;;  %v3312_v43 = vld [vmem:[#allocation4 + $0x5e8] ss:$16 sps:$4 sm:$0xff]  }
 0x16d   :  { %2040 = vmatprep.subr.bf16.mxu0 %v3245_v44  ;;  %2204 = vmatprep.subr.bf16.mxu1 %v3248_v45  ;;  %v3317_v44 = vld [vmem:[#allocation4 + $0x604] ss:$16 sps:$4 sm:$0xff]   ;;  %v3320_v45 = vld [vmem:[#allocation4 + $0x60c] ss:$16 sps:$4 sm:$0xff]   ;;  %v391_v28 = vpack.c.bf16 %v383_v3, %v383_v3  ;;  %v3396_v3 = vld [vmem:[#allocation4 + $0x7a8] ss:$16 sps:$4 sm:$0xff]  }
 0x170   :  { %2041 = vmatpush1.bf16.msra.mxu0 %v3243_v46  ;;  %2205 = vmatpush1.bf16.msra.mxu1 %v3246_v47  ;;  %v388_v46 = vpack.c.bf16 %v380_v36, %v380_v36  ;;  %v3315_v47 = vld [vmem:[#allocation4 + $0x600] ss:$16 sps:$4 sm:$0xff]   ;;  %v3390_v36 = vld [vmem:[#allocation4 + $0x788] ss:$16 sps:$4 sm:$0xff]  }
 0x171   :  { %2042 = vmatprep.subr.bf16.mxu0 %v3251_v48  ;;  %2206 = vmatprep.subr.bf16.mxu1 %v3254_v49  ;;  %v3318_v48 = vld [vmem:[#allocation4 + $0x608] ss:$16 sps:$4 sm:$0xff]   ;;  %v3323_v49 = vld [vmem:[#allocation4 + $0x624] ss:$16 sps:$4 sm:$0xff]  }
 0x174   :  { %2043 = vmatpush1.bf16.msra.mxu0 %v3249_v50  ;;  %2207 = vmatpush1.bf16.msra.mxu1 %v3252_v52  ;;  %v3326_v50 = vld [vmem:[#allocation4 + $0x62c] ss:$16 sps:$4 sm:$0xff]   ;;  %v3321_v52 = vld [vmem:[#allocation4 + $0x620] ss:$16 sps:$4 sm:$0xff]  }
 0x175   :  { %2044 = vmatprep.subr.bf16.mxu0 %v3257_v53  ;;  %2208 = vmatprep.subr.bf16.mxu1 %v3260_v54  ;;  %v3324_v53 = vld [vmem:[#allocation4 + $0x628] ss:$16 sps:$4 sm:$0xff]   ;;  %v3329_v54 = vld [vmem:[#allocation4 + $0x644] ss:$16 sps:$4 sm:$0xff]  }
 0x178   :  { %2045 = vmatpush1.bf16.msra.mxu0 %v3255_v55  ;;  %2209 = vmatpush1.bf16.msra.mxu1 %v3258_v56  ;;  %v3332_v55 = vld [vmem:[#allocation4 + $0x64c] ss:$16 sps:$4 sm:$0xff]   ;;  %v3327_v56 = vld [vmem:[#allocation4 + $0x640] ss:$16 sps:$4 sm:$0xff]  }
 0x179   :  { %2046 = vmatprep.subr.bf16.mxu0 %v3263_v57  ;;  %2210 = vmatprep.subr.bf16.mxu1 %v3266_v58  ;;  %v3330_v57 = vld [vmem:[#allocation4 + $0x648] ss:$16 sps:$4 sm:$0xff]   ;;  %v3335_v58 = vld [vmem:[#allocation4 + $0x664] ss:$16 sps:$4 sm:$0xff]  }
 0x17c   :  { %2047 = vmatpush1.bf16.msra.mxu0 %v3261_v59  ;;  %2211 = vmatpush1.bf16.msra.mxu1 %v3264_v60  ;;  %v3338_v59 = vld [vmem:[#allocation4 + $0x66c] ss:$16 sps:$4 sm:$0xff]   ;;  %v3333_v60 = vld [vmem:[#allocation4 + $0x660] ss:$16 sps:$4 sm:$0xff]  }
 0x17d   :  { %2048 = vmatprep.subr.bf16.mxu0 %v3269_v62  ;;  %2212 = vmatprep.subr.bf16.mxu1 %v3272_v63  ;;  %v3336_v62 = vld [vmem:[#allocation4 + $0x668] ss:$16 sps:$4 sm:$0xff]   ;;  %v3341_v63 = vld [vmem:[#allocation4 + $0x684] ss:$16 sps:$4 sm:$0xff]  }
 0x180   :  { %2049 = vmatpush1.bf16.msra.mxu0 %v3267_v0  ;;  %2213 = vmatpush1.bf16.msra.mxu1 %v3270_v1  ;;  %v3344_v0 = vld [vmem:[#allocation4 + $0x68c] ss:$16 sps:$4 sm:$0xff]   ;;  %v3339_v1 = vld [vmem:[#allocation4 + $0x680] ss:$16 sps:$4 sm:$0xff]  }
 0x181   :  { %2050 = vmatprep.subr.bf16.mxu0 %v3275_v2  ;;  %2214 = vmatprep.subr.bf16.mxu1 %v3278_v5  ;;  %v3342_v2 = vld [vmem:[#allocation4 + $0x688] ss:$16 sps:$4 sm:$0xff]   ;;  %v3347_v5 = vld [vmem:[#allocation4 + $0x6a4] ss:$16 sps:$4 sm:$0xff]  }
 0x184   :  { %2051 = vmatpush1.bf16.msra.mxu0 %v3273_v6  ;;  %2215 = vmatpush1.bf16.msra.mxu1 %v3276_v7  ;;  %v3350_v6 = vld [vmem:[#allocation4 + $0x6ac] ss:$16 sps:$4 sm:$0xff]   ;;  %v3345_v7 = vld [vmem:[#allocation4 + $0x6a0] ss:$16 sps:$4 sm:$0xff]  }
 0x185   :  { %2052 = vmatprep.subr.bf16.mxu0 %v3281_v8  ;;  %2216 = vmatprep.subr.bf16.mxu1 %v3284_v9  ;;  %v3348_v8 = vld [vmem:[#allocation4 + $0x6a8] ss:$16 sps:$4 sm:$0xff]   ;;  %v3353_v9 = vld [vmem:[#allocation4 + $0x6c4] ss:$16 sps:$4 sm:$0xff]  }
 0x188   :  { %2053 = vmatpush1.bf16.msra.mxu0 %v3279_v10  ;;  %2217 = vmatpush1.bf16.msra.mxu1 %v3282_v11  ;;  %v3356_v10 = vld [vmem:[#allocation4 + $0x6cc] ss:$16 sps:$4 sm:$0xff]   ;;  %v3351_v11 = vld [vmem:[#allocation4 + $0x6c0] ss:$16 sps:$4 sm:$0xff]  }
 0x189   :  { %2054 = vmatprep.subr.bf16.mxu0 %v3287_v12  ;;  %2218 = vmatprep.subr.bf16.mxu1 %v3290_v13  ;;  %v3354_v12 = vld [vmem:[#allocation4 + $0x6c8] ss:$16 sps:$4 sm:$0xff]   ;;  %v3359_v13 = vld [vmem:[#allocation4 + $0x6e4] ss:$16 sps:$4 sm:$0xff]  }
 0x18c   :  { %2055 = vmatpush1.bf16.msra.mxu0 %v3285_v14  ;;  %2219 = vmatpush1.bf16.msra.mxu1 %v3288_v15  ;;  %v3362_v14 = vld [vmem:[#allocation4 + $0x6ec] ss:$16 sps:$4 sm:$0xff]   ;;  %v3357_v15 = vld [vmem:[#allocation4 + $0x6e0] ss:$16 sps:$4 sm:$0xff]  }
 0x18d   :  { %2056 = vmatprep.subr.bf16.mxu0 %v3293_v16  ;;  %2220 = vmatprep.subr.bf16.mxu1 %v3296_v17  ;;  %v3360_v16 = vld [vmem:[#allocation4 + $0x6e8] ss:$16 sps:$4 sm:$0xff]   ;;  %v3365_v17 = vld [vmem:[#allocation4 + $0x704] ss:$16 sps:$4 sm:$0xff]  }
 0x190   :  { %2057 = vmatpush1.bf16.msra.mxu0 %v3291_v19  ;;  %2221 = vmatpush1.bf16.msra.mxu1 %v3294_v20  ;;  %v3363_v19 = vld [vmem:[#allocation4 + $0x700] ss:$16 sps:$4 sm:$0xff]   ;;  %v3366_v20 = vld [vmem:[#allocation4 + $0x708] ss:$16 sps:$4 sm:$0xff]  }
 0x191   :  { %2058 = vmatprep.subr.bf16.mxu0 %v3299_v21  ;;  %2222 = vmatprep.subr.bf16.mxu1 %v3302_v51  ;;  %v3371_v21 = vld [vmem:[#allocation4 + $0x724] ss:$16 sps:$4 sm:$0xff]   ;;  %v3374_v51 = vld [vmem:[#allocation4 + $0x72c] ss:$16 sps:$4 sm:$0xff]  }
 0x194   :  { %2059 = vmatpush1.bf16.msra.mxu0 %v3297_v24  ;;  %2223 = vmatpush1.bf16.msra.mxu1 %v3300_v26  ;;  %v3377_v24 = vld [vmem:[#allocation4 + $0x744] ss:$16 sps:$4 sm:$0xff]   ;;  %v3380_v26 = vld [vmem:[#allocation4 + $0x74c] ss:$16 sps:$4 sm:$0xff]  }
 0x195   :  { %2060 = vmatprep.subr.bf16.mxu0 %v3305_v27  ;;  %2224 = vmatprep.subr.bf16.mxu1 %v3308_v4  ;;  %v3375_v27 = vld [vmem:[#allocation4 + $0x740] ss:$16 sps:$4 sm:$0xff]   ;;  %v3378_v4 = vld [vmem:[#allocation4 + $0x748] ss:$16 sps:$4 sm:$0xff]  }
 0x198   :  { %2061 = vmatpush1.bf16.msra.mxu0 %v3303_v31  ;;  %2225 = vmatpush1.bf16.msra.mxu1 %v3306_v32  ;;  %v3381_v31 = vld [vmem:[#allocation4 + $0x760] ss:$16 sps:$4 sm:$0xff]   ;;  %v3384_v32 = vld [vmem:[#allocation4 + $0x768] ss:$16 sps:$4 sm:$0xff]  }
 0x199   :  { %2062 = vmatprep.subr.bf16.mxu0 %v3311_v33  ;;  %2226 = vmatprep.subr.bf16.mxu1 %v3314_v34  ;;  %v3389_v33 = vld [vmem:[#allocation4 + $0x784] ss:$16 sps:$4 sm:$0xff]   ;;  %v3392_v34 = vld [vmem:[#allocation4 + $0x78c] ss:$16 sps:$4 sm:$0xff]  }
 0x19c   :  { %2063 = vmatpush1.bf16.msra.mxu0 %v3309_v37  ;;  %2227 = vmatpush1.bf16.msra.mxu1 %v3312_v43  ;;  %v114_v37 = vsub.s32 6, %v3606_v38  ;;  %v3395_v43 = vld [vmem:[#allocation4 + $0x7a4] ss:$16 sps:$4 sm:$0xff]  }
 0x19d   :  { %2073 = vmatprep.subr.bf16.mxu0 %v3317_v44  ;;  %2237 = vmatprep.subr.bf16.mxu1 %v3320_v45  ;;  %v3398_v44 = vld [vmem:[#allocation4 + $0x7ac] ss:$16 sps:$4 sm:$0xff]   ;;  %v3393_v45 = vld [vmem:[#allocation4 + $0x7a0] ss:$16 sps:$4 sm:$0xff]  }
 0x19f   :  { %2065 = vmatmul.mubr.bf16.vlgmr.msra.gmra.mrb[8].mxu0 %v388_v46  ;;  %2229 = vmatmul.mubr.bf16.vlgmr.msra.gmra.mrb[8].mxu1 %v388_v46  ;;  %v115_v46 = vrot.slane %v3612_v40, %v114_v37  ;;  %v3411_v40 = vld [vmem:[#allocation6 + $0x40] sm:$0xff]  }
 0x1a0   :  { %2074 = vmatpush1.bf16.msra.mxu0 %v3315_v47  ;;  %2238 = vmatpush1.bf16.msra.mxu1 %v3318_v48  ;;  %v3401_v47 = vld [vmem:[#allocation4 + $0x7c4] ss:$16 sps:$4 sm:$0xff]   ;;  %v3404_v48 = vld [vmem:[#allocation4 + $0x7cc] ss:$16 sps:$4 sm:$0xff]  }
 0x1a1   :  { %2075 = vmatprep.subr.bf16.mxu0 %v3323_v49  ;;  %2239 = vmatprep.subr.bf16.mxu1 %v3326_v50  ;;  %v3399_v49 = vld [vmem:[#allocation4 + $0x7c0] ss:$16 sps:$4 sm:$0xff]   ;;  %v3402_v50 = vld [vmem:[#allocation4 + $0x7c8] ss:$16 sps:$4 sm:$0xff]  }
 0x1a2   :  { %2105 = vmatprep.mubr.bf16.mxu0 %v391_v28  ;;  %2269 = vmatprep.mubr.bf16.mxu1 %v391_v28  ;;  %v370_v28 = vadd.f32 %v3631_v25, %v115_v46  ;;  %v3415_v25 = vld [vmem:[#allocation6 + $0x48] sm:$0xff]  }
 0x1a4   :  { %2076 = vmatpush1.bf16.msra.mxu0 %v3321_v52  ;;  %2240 = vmatpush1.bf16.msra.mxu1 %v3324_v53  ;;  %v3407_v52 = vld [vmem:[#allocation4 + $0x7e4] ss:$16 sps:$4 sm:$0xff]   ;;  %v3410_v53 = vld [vmem:[#allocation4 + $0x7ec] ss:$16 sps:$4 sm:$0xff]  }
 0x1a5   :  { %2077 = vmatprep.subr.bf16.mxu0 %v3329_v54  ;;  %2241 = vmatprep.subr.bf16.mxu1 %v3332_v55  ;;  %v3405_v54 = vld [vmem:[#allocation4 + $0x7e0] ss:$16 sps:$4 sm:$0xff]   ;;  %v3408_v55 = vld [vmem:[#allocation4 + $0x7e8] ss:$16 sps:$4 sm:$0xff]  }
 0x1a8   :  { %2078 = vmatpush1.bf16.msra.mxu0 %v3327_v56  ;;  %2242 = vmatpush1.bf16.msra.mxu1 %v3330_v57  ;;  %v382_v56 = vmax.f32 %v370_v28, 0.0  ;;  %v3412_v57 = vld [vmem:[#allocation6 + $0xc0] sm:$0xff]  }
 0x1a9   :  { %2079 = vmatprep.subr.bf16.mxu0 %v3335_v58  ;;  %2243 = vmatprep.subr.bf16.mxu1 %v3338_v59  ;;  %v3413_v58 = vld [vmem:[#allocation6] sm:$0xff]  }
 0x1aa   :  { %v3414_v59 = vld [vmem:[#allocation6 + $0x80] sm:$0xff]  }
 0x1ac   :  { %2080 = vmatpush1.bf16.msra.mxu0 %v3333_v60  ;;  %2244 = vmatpush1.bf16.msra.mxu1 %v3336_v62  ;;  %v390_v60 = vpack.c.bf16 %v382_v56, %v382_v56  ;;  %v3416_v62 = vld [vmem:[#allocation6 + $0xc8] sm:$0xff]  }
 0x1ad   :  { %2081 = vmatprep.subr.bf16.mxu0 %v3341_v63  ;;  %2245 = vmatprep.subr.bf16.mxu1 %v3344_v0  ;;  %v3417_v63 = vld [vmem:[#allocation6 + $0x8] sm:$0xff]  }
 0x1ae   :  { %v3418_v0 = vld [vmem:[#allocation6 + $0x88] sm:$0xff]  }
 0x1b0   :  { %2082 = vmatpush1.bf16.msra.mxu0 %v3339_v1  ;;  %2246 = vmatpush1.bf16.msra.mxu1 %v3342_v2  ;;  %v3419_v1 = vld [vmem:[#allocation6 + $0x50] sm:$0xff]  }
 0x1b1   :  { %2083 = vmatprep.subr.bf16.mxu0 %v3347_v5  ;;  %2247 = vmatprep.subr.bf16.mxu1 %v3350_v6  ;;  %v3420_v2 = vld [vmem:[#allocation6 + $0xd0] sm:$0xff]  }
 0x1b2   :  { %v3421_v5 = vld [vmem:[#allocation6 + $0x10] sm:$0xff]  }
 0x1b3   :  { %v3422_v6 = vld [vmem:[#allocation6 + $0x90] sm:$0xff]  }
 0x1b4   :  { %2084 = vmatpush1.bf16.msra.mxu0 %v3345_v7  ;;  %2248 = vmatpush1.bf16.msra.mxu1 %v3348_v8  ;;  %v3423_v7 = vld [vmem:[#allocation6 + $0x58] sm:$0xff]  }
 0x1b5   :  { %2085 = vmatprep.subr.bf16.mxu0 %v3353_v9  ;;  %2249 = vmatprep.subr.bf16.mxu1 %v3356_v10  ;;  %v3424_v8 = vld [vmem:[#allocation6 + $0xd8] sm:$0xff]  }
 0x1b6   :  { %v3425_v9 = vld [vmem:[#allocation6 + $0x18] sm:$0xff]  }
 0x1b7   :  { %v3426_v10 = vld [vmem:[#allocation6 + $0x98] sm:$0xff]  }
 0x1b8   :  { %2086 = vmatpush1.bf16.msra.mxu0 %v3351_v11  ;;  %2250 = vmatpush1.bf16.msra.mxu1 %v3354_v12  ;;  %v3427_v11 = vld [vmem:[#allocation6 + $0x60] sm:$0xff]  }
 0x1b9   :  { %2087 = vmatprep.subr.bf16.mxu0 %v3359_v13  ;;  %2251 = vmatprep.subr.bf16.mxu1 %v3362_v14  ;;  %v3428_v12 = vld [vmem:[#allocation6 + $0xe0] sm:$0xff]  }
 0x1ba   :  { %v3429_v13 = vld [vmem:[#allocation6 + $0x20] sm:$0xff]  }
 0x1bb   :  { %v3430_v14 = vld [vmem:[#allocation6 + $0xa0] sm:$0xff]  }
 0x1bc   :  { %2088 = vmatpush1.bf16.msra.mxu0 %v3357_v15  ;;  %2252 = vmatpush1.bf16.msra.mxu1 %v3360_v16  ;;  %v3431_v15 = vld [vmem:[#allocation6 + $0x68] sm:$0xff]  }
 0x1bd   :  { %2089 = vmatprep.subr.bf16.mxu0 %v3365_v17  ;;  %2253 = vmatprep.subr.bf16.mxu1 %v3368_v18  ;;  %v3432_v16 = vld [vmem:[#allocation6 + $0xe8] sm:$0xff]  }
 0x1be   :  { %v3433_v17 = vld [vmem:[#allocation6 + $0x28] sm:$0xff]  }
 0x1bf   :  { %v3434_v18 = vld [vmem:[#allocation6 + $0xa8] sm:$0xff]  }
 0x1c0   :  { %2090 = vmatpush1.bf16.msra.mxu0 %v3363_v19  ;;  %2254 = vmatpush1.bf16.msra.mxu1 %v3366_v20  ;;  %v3435_v19 = vld [vmem:[#allocation6 + $0x70] sm:$0xff]  }
 0x1c1   :  { %2091 = vmatprep.subr.bf16.mxu0 %v3371_v21  ;;  %2255 = vmatprep.subr.bf16.mxu1 %v3374_v51  ;;  %v3436_v20 = vld [vmem:[#allocation6 + $0xf0] sm:$0xff]  }
 0x1c2   :  { %v3437_v21 = vld [vmem:[#allocation6 + $0x30] sm:$0xff]  }
 0x1c3   :  { %v3438_v51 = vld [vmem:[#allocation6 + $0xb0] sm:$0xff]  }
 0x1c4   :  { %2092 = vmatpush1.bf16.msra.mxu0 %v3369_v22  ;;  %2256 = vmatpush1.bf16.msra.mxu1 %v3372_v23  ;;  %v3439_v22 = vld [vmem:[#allocation6 + $0x78] sm:$0xff]  }
 0x1c5   :  { %2093 = vmatprep.subr.bf16.mxu0 %v3377_v24  ;;  %2257 = vmatprep.subr.bf16.mxu1 %v3380_v26  ;;  %v3440_v23 = vld [vmem:[#allocation6 + $0xf8] sm:$0xff]  }
 0x1c6   :  { %v3441_v24 = vld [vmem:[#allocation6 + $0x38] sm:$0xff]  }
 0x1c7   :  { %v3442_v26 = vld [vmem:[#allocation6 + $0xb8] sm:$0xff]  }
 0x1c8   :  { %2094 = vmatpush1.bf16.msra.mxu0 %v3375_v27  ;;  %2258 = vmatpush1.bf16.msra.mxu1 %v3378_v4  ;;  %v648_v27 = vld [vmem:[%s3673_s4] sm:$0xf] }
 0x1c9   :  { %2095 = vmatprep.subr.bf16.mxu0 %v3383_v29  ;;  %2259 = vmatprep.subr.bf16.mxu1 %v3386_v30  ;;  %v653_v4 = vrot.slane %v648_v27, %v90_v39  ;;  %v661_v29 = vrot.slane %v648_v27, %v98_v61  ;;  %v657_v30 = vrot.slane %v648_v27, %v94_v41 }
 0x1cc   :  { %2096 = vmatpush1.bf16.msra.mxu0 %v3381_v31  ;;  %2260 = vmatpush1.bf16.msra.mxu1 %v3384_v32  ;;  %v665_v31 = vrot.slane %v648_v27, %v102_v42 }
 0x1cd   :  { %2097 = vmatprep.subr.bf16.mxu0 %v3389_v33  ;;  %2261 = vmatprep.subr.bf16.mxu1 %v3392_v34 }
 0x1d0   :  { %2098 = vmatpush1.bf16.msra.mxu0 %v3387_v35  ;;  %2262 = vmatpush1.bf16.msra.mxu1 %v3390_v36 }
 0x1d1   :  { %2099 = vmatprep.subr.bf16.mxu0 %v3395_v43  ;;  %2263 = vmatprep.subr.bf16.mxu1 %v3398_v44 }
 0x1d4   :  { %2100 = vmatpush1.bf16.msra.mxu0 %v3393_v45  ;;  %2264 = vmatpush1.bf16.msra.mxu1 %v3396_v3 }
 0x1d5   :  { %2101 = vmatprep.subr.bf16.mxu0 %v3401_v47  ;;  %2265 = vmatprep.subr.bf16.mxu1 %v3404_v48 }
 0x1d8   :  { %2102 = vmatpush1.bf16.msra.mxu0 %v3399_v49  ;;  %2266 = vmatpush1.bf16.msra.mxu1 %v3402_v50 }
 0x1d9   :  { %2103 = vmatprep.subr.bf16.mxu0 %v3407_v52  ;;  %2267 = vmatprep.subr.bf16.mxu1 %v3410_v53  ;;  %v2912_v53 = vld [vmem:[%s3675_s6] ss:$0 sm:$0xff] }
 0x1dc   :  { %2104 = vmatpush1.bf16.msra.mxu0 %v3405_v54  ;;  %2268 = vmatpush1.bf16.msra.mxu1 %v3408_v55 }
 0x1dd   :  { %2945 = vmatprep.subr.bf16.mxu0 %v3411_v40  ;;  %2967 = vmatprep.subr.bf16.mxu1 %v3412_v57 }
 0x1df   :  { %2106 = vmatmul.mubr.bf16.vlgmr.msra.gmra.mrb[8].mxu0 %v390_v60  ;;  %2270 = vmatmul.mubr.bf16.vlgmr.msra.gmra.mrb[8].mxu1 %v390_v60 }
 0x1e0   :  { %2946 = vmatpush3.bf16.msra.mxu0 %v3413_v58  ;;  %2968 = vmatpush3.bf16.msra.mxu1 %v3414_v59 }
 0x1e1   :  { %2947 = vmatprep.subr.bf16.mxu0 %v3415_v25  ;;  %2969 = vmatprep.subr.bf16.mxu1 %v3416_v62 }
 0x1e4   :  { %2948 = vmatpush3.bf16.msra.mxu0 %v3417_v63  ;;  %2970 = vmatpush3.bf16.msra.mxu1 %v3418_v0 }
 0x1e5   :  { %2949 = vmatprep.subr.bf16.mxu0 %v3419_v1  ;;  %2971 = vmatprep.subr.bf16.mxu1 %v3420_v2 }
 0x1e8   :  { %2950 = vmatpush3.bf16.msra.mxu0 %v3421_v5  ;;  %2972 = vmatpush3.bf16.msra.mxu1 %v3422_v6 }
 0x1e9   :  { %2951 = vmatprep.subr.bf16.mxu0 %v3423_v7  ;;  %2973 = vmatprep.subr.bf16.mxu1 %v3424_v8 }
 0x1ec   :  { %2952 = vmatpush3.bf16.msra.mxu0 %v3425_v9  ;;  %2974 = vmatpush3.bf16.msra.mxu1 %v3426_v10 }
 0x1ed   :  { %2953 = vmatprep.subr.bf16.mxu0 %v3427_v11  ;;  %2975 = vmatprep.subr.bf16.mxu1 %v3428_v12 }
 0x1f0   :  { %2954 = vmatpush3.bf16.msra.mxu0 %v3429_v13  ;;  %2976 = vmatpush3.bf16.msra.mxu1 %v3430_v14 }
 0x1f1   :  { %2955 = vmatprep.subr.bf16.mxu0 %v3431_v15  ;;  %2977 = vmatprep.subr.bf16.mxu1 %v3432_v16 }
 0x1f4   :  { %2956 = vmatpush3.bf16.msra.mxu0 %v3433_v17  ;;  %2978 = vmatpush3.bf16.msra.mxu1 %v3434_v18 }
 0x1f5   :  { %2957 = vmatprep.subr.bf16.mxu0 %v3435_v19  ;;  %2979 = vmatprep.subr.bf16.mxu1 %v3436_v20 }
 0x1f8   :  { %2958 = vmatpush3.bf16.msra.mxu0 %v3437_v21  ;;  %2980 = vmatpush3.bf16.msra.mxu1 %v3438_v51 }
 0x1f9   :  { %2959 = vmatprep.subr.bf16.mxu0 %v3439_v22  ;;  %2981 = vmatprep.subr.bf16.mxu1 %v3440_v23 }
 0x1fc   :  { %2960 = vmatpush3.bf16.msra.mxu0 %v3441_v24  ;;  %2982 = vmatpush3.bf16.msra.mxu1 %v3442_v26 }
 0x2b2   :  { %v2107_v32 = vpop.f32.mrb[8].mxu0  ;;  %v2271_v33 = vpop.f32.mrb[8].mxu1 }
 0x2b3   :  { %v2989_v34 = vadd.f32 %v2107_v32, %v653_v4  ;;  %v2991_v35 = vadd.f32 %v2271_v33, %v661_v29  ;;  %v2109_v36 = vpop.f32.mrb[9].mxu0  ;;  %v2273_v37 = vpop.f32.mrb[9].mxu1 }
 0x2b4   :  { %v2990_v43 = vadd.f32 %v2109_v36, %v657_v30  ;;  %v2992_v44 = vadd.f32 %v2273_v37, %v665_v31  ;;  %v2111_v45 = vpop.f32.mrb[10].mxu0  ;;  %v2275_v3 = vpop.f32.mrb[10].mxu1 }
 0x2b5   :  { %v2278_v39 = vmax.f32 %v2989_v34, 0.0  ;;  %v2280_v46 = vmax.f32 %v2991_v35, 0.0  ;;  %v2112_v47 = vpop.f32.mrb[11].mxu0  ;;  %v2276_v61 = vpop.f32.mrb[11].mxu1 }
 0x2b6   :  { %v2279_v48 = vmax.f32 %v2990_v43, 0.0  ;;  %v2281_v49 = vmax.f32 %v2992_v44, 0.0 }
 0x2b7   :  { %v2282_v38 = vpack.c.bf16 %v2278_v39, %v2278_v39  ;;  %v2284_v42 = vpack.c.bf16 %v2280_v46, %v2280_v46 }
 0x2b8   :  { %v2283_v41 = vpack.c.bf16 %v2279_v48, %v2279_v48  ;;  %v2285_v50 = vpack.c.bf16 %v2281_v49, %v2281_v49 }
 0x2ba   :  { %2581 = vmatprep.mubr.bf16.mxu0 %v2283_v41  ;;  %2621 = vmatprep.mubr.bf16.mxu1 %v2285_v50 }
 0x2bb   :  { %2582 = vmatmul.mubr.bf16.vlgmr.msra.gmra.mrb[12].mxu0 %v2282_v38  ;;  %2622 = vmatmul.mubr.bf16.vlgmr.msra.gmra.mrb[12].mxu1 %v2284_v42 }
 0x38e   :  { %v2961_v28 = vpop.f32.mrb[12].mxu0  ;;  %v2983_v52 = vpop.f32.mrb[12].mxu1 }
 0x38f   :  { %v2962_v54 = vpop.f32.mrb[13].mxu0  ;;  %v2984_v55 = vpop.f32.mrb[13].mxu1 }
 0x390   :  { %v2963_v56 = vadd.f32 %v2962_v54, %v2961_v28  ;;  %v2985_v40 = vadd.f32 %v2984_v55, %v2983_v52  ;;  %v2964_v57 = vpop.f32.mrb[14].mxu0  ;;  %v2986_v58 = vpop.f32.mrb[14].mxu1 }
 0x391   :  { %v2965_v59 = vpop.f32.mrb[15].mxu0  ;;  %v2987_v60 = vpop.f32.mrb[15].mxu1 }
 0x392   :  { %v2584_v25 = vadd.f32 %v2963_v56, %v2912_v53 }
 0x394   :  { %v2624_v62 = vadd.f32 %v2985_v40, %v2584_v25 }
 0x396   :  { %2629 = vst [vmem:[%s3676_s7] sm:$0xff] %v2624_v62 }
 0x397   :  { %2634 = vsyncpa [#allocation3], 1 }
 0x398   :  { %2635 = vsyncpa [#allocation5], 1 }

</bundles_post_ra>
